<compile_context>
chip_gen: v7x
topology: tpu7x:2x2x1
jax: 0.10.0
libtpu: 0.0.40
codegen_flags: <defaults>
</compile_context>

<pallas_src>
import numpy as np
import jax
import jax.numpy as jnp
from jax import lax
from jax.experimental import pallas as pl
from jax.experimental.pallas import tpu as pltpu

FEA_DIM = 3                 # ptBEVnet default fea_dim
INIT_DIM = 32               # PyTorch default ppmodel_init_dim
POOL_DIM = INIT_DIM * 8     # 256
GRID_SIZE = (16, 16)        # (grid_size[0], grid_size[1])
EPS = 1e-5

LANE = 128
RES_PAD = 128               # residual features zero-padded to one lane-dense chunk
PP_TILE_N = 2048            # MLP row tile
SEG_N_TILE = 512            # segment-max point tile (reduction axis)
V_SUB = 8                   # voxel rows per early-out sub-block (W % V_SUB == 0)
NEG_INF = float("-inf")


def _round_up(x, m):
    return ((x + m - 1) // m) * m


# ----------------------------------------------------------------------------
# Kernel 1: PPmodel_in  (BN folded into 4 Linears: 3x [Linear+ReLU] -> Linear)
#   in : full concatenated feature slab (pos + residual), f32
#   out: processed (bf16, 256 lanes) and residual pass-through (f32, 128 lanes)
# ----------------------------------------------------------------------------
def _make_ppmodel_kernel(res_dim):
    def kernel(x_ref, w1, b1, w2, b2, w3, b3, w4, b4, proc_ref, res_ref):
        x = x_ref[...]                                           # (T, cat_w) f32
        # Layer 1 (input-BN + Linear1 + BN folded) in f32: K is tiny, and this keeps
        # the folded normalization at full precision before any bf16 rounding.
        h = jnp.dot(x, w1[...], preferred_element_type=jnp.float32) + b1[...]
        h = jnp.maximum(h, 0.0)

        def dense(v, w_ref, b_ref, relu):
            y = jnp.dot(v.astype(jnp.bfloat16), w_ref[...],
                        preferred_element_type=jnp.float32) + b_ref[...]
            return jnp.maximum(y, 0.0) if relu else y

        h = dense(h, w2, b2, True)
        h = dense(h, w3, b3, True)
        y = dense(h, w4, b4, False)
        proc_ref[...] = y.astype(jnp.bfloat16)                   # bf16 writeback

        # Residual pass-through, zero-padded to a lane-dense 128-wide slab.
        res = x[:, FEA_DIM:FEA_DIM + res_dim]
        if res_dim < RES_PAD:
            res = jnp.concatenate(
                [res, jnp.zeros((x.shape[0], RES_PAD - res_dim), jnp.float32)],
                axis=1)
        res_ref[...] = res

    return kernel


def ppmodel_forward(x_pad, params, res_dim, tile_n):
    n_pad, cat_w = x_pad.shape
    assert n_pad % tile_n == 0 and tile_n % 8 == 0
    w1, b1, w2, b2, w3, b3, w4, b4 = params
    # zero-pad the folded first-layer weight rows to the concatenated slab width
    w1p = jnp.zeros((cat_w, w1.shape[1]), jnp.float32).at[:w1.shape[0]].set(w1)
    args = (w1p, b1, w2, b2, w3, b3, w4, b4)

    def full_spec(p):
        return pl.BlockSpec(p.shape, lambda i: (0, 0))

    return pl.pallas_call(
        _make_ppmodel_kernel(res_dim),
        grid=(n_pad // tile_n,),
        in_specs=[pl.BlockSpec((tile_n, cat_w), lambda i: (i, 0))]
                 + [full_spec(p) for p in args],
        out_specs=[pl.BlockSpec((tile_n, POOL_DIM), lambda i: (i, 0)),
                   pl.BlockSpec((tile_n, RES_PAD), lambda i: (i, 0))],
        out_shape=[jax.ShapeDtypeStruct((n_pad, POOL_DIM), jnp.bfloat16),
                   jax.ShapeDtypeStruct((n_pad, RES_PAD), jnp.float32)],
        compiler_params=pltpu.CompilerParams(dimension_semantics=("parallel",)),
    )(x_pad, *args)


# ----------------------------------------------------------------------------
# Kernel 2: fused segment-max (scatter_max) + dense BEV grid build + 3x3 max pool
#   grid = (batch [parallel], point tiles [arbitrary, reduction last])
#   VMEM scratch (H, W, 384) f32 is the per-batch resident accumulator.
# ----------------------------------------------------------------------------
def _bev_kernel(ids_ref, proc_ref, res_ref, out_ref, res_out_ref, acc_ref):
    H, W = GRID_SIZE
    HW = H * W
    b = pl.program_id(0)
    n_blk = pl.program_id(1)
    n_tile = proc_ref.shape[0]

    @pl.when(n_blk == 0)
    def _init():
        acc_ref[...] = jnp.full(acc_ref.shape, NEG_INF, acc_ref.dtype)

    ids = ids_ref[...]                                           # (1, n_tile) i32
    # hoist the three 128-lane feature chunks (cast once per grid step)
    chunks = (proc_ref[:, 0:LANE].astype(jnp.float32),
              proc_ref[:, LANE:2 * LANE].astype(jnp.float32),
              res_ref[...])
    row = lax.broadcasted_iota(jnp.int32, (V_SUB, n_tile), 0)
    base = b * HW

    for s in range(HW // V_SUB):
        vstart = s * V_SUB
        h_idx = vstart // W
        w_idx = vstart % W
        mask = (row + (base + vstart)) == ids                    # (V_SUB, n_tile)
        hit = jnp.any(mask)                                      # early-out (sorted ids)

        @pl.when(hit)
        def _update(mask=mask, h_idx=h_idx, w_idx=w_idx):
            # additive -inf bias; relayout done ONCE and reused for all 3 chunks
            neg = jnp.where(mask, 0.0, NEG_INF)[:, :, None]      # (V_SUB, n_tile, 1)
            for c in range(3):
                sel = chunks[c][None, :, :] + neg                # (V_SUB, n_tile, 128)
                cmax = jnp.max(sel, axis=1)                      # (V_SUB, 128)
                cur = acc_ref[h_idx, w_idx:w_idx + V_SUB, c * LANE:(c + 1) * LANE]
                acc_ref[h_idx, w_idx:w_idx + V_SUB, c * LANE:(c + 1) * LANE] = (
                    jnp.maximum(cur, cmax))

    @pl.when(n_blk == pl.num_programs(1) - 1)
    def _finalize():
        acc = acc_ref[...]                                       # (H, W, 384)
        acc = jnp.where(acc == NEG_INF, 0.0, acc)                # empty voxels -> 0
        g = acc[:, :, :POOL_DIM]                                 # (H, W, 256)
        # 3x3 stride-1 max pool, -inf borders (PyTorch MaxPool2d(3,1,1)):
        # H pass via free major-axis slices, W pass via XLU roll + border masks.
        ninf_row = jnp.full((1, W, POOL_DIM), NEG_INF, jnp.float32)
        gh = jnp.concatenate([ninf_row, g, ninf_row], axis=0)    # (H+2, W, 256)
        hmax = jnp.maximum(jnp.maximum(gh[0:H], gh[1:H + 1]), gh[2:H + 2])
        wj = lax.broadcasted_iota(jnp.int32, (H, W, POOL_DIM), 1)
        wm1 = jnp.where(wj == 0, NEG_INF, pltpu.roll(hmax, shift=1, axis=1))
        wp1 = jnp.where(wj == W - 1, NEG_INF, pltpu.roll(hmax, shift=W - 1, axis=1))
        out_ref[0] = jnp.maximum(jnp.maximum(hmax, wm1), wp1)
        res_out_ref[0] = acc[:, :, POOL_DIM:]


def bev_scatter_pool(ids_pad, proc, res, num_batch):
    H, W = GRID_SIZE
    n_pad = proc.shape[0]
    assert n_pad % SEG_N_TILE == 0 and W % V_SUB == 0
    ids2d = ids_pad.reshape(1, n_pad)
    return pl.pallas_call(
        _bev_kernel,
        grid=(num_batch, n_pad // SEG_N_TILE),                   # reduction axis last
        in_specs=[
            pl.BlockSpec((1, SEG_N_TILE), lambda b, n: (0, n)),
            pl.BlockSpec((SEG_N_TILE, POOL_DIM), lambda b, n: (n, 0)),
            pl.BlockSpec((SEG_N_TILE, RES_PAD), lambda b, n: (n, 0)),
        ],
        out_specs=[
            pl.BlockSpec((1, H, W, POOL_DIM), lambda b, n: (b, 0, 0, 0)),
            pl.BlockSpec((1, H, W, RES_PAD), lambda b, n: (b, 0, 0, 0)),
        ],
        out_shape=[
            jax.ShapeDtypeStruct((num_batch, H, W, POOL_DIM), jnp.float32),
            jax.ShapeDtypeStruct((num_batch, H, W, RES_PAD), jnp.float32),
        ],
        scratch_shapes=[pltpu.VMEM((H, W, POOL_DIM + RES_PAD), jnp.float32)],
        compiler_params=pltpu.CompilerParams(
            dimension_semantics=("parallel", "arbitrary")),
    )(ids2d, proc, res)


# ----------------------------------------------------------------------------
# Parameter init: eval-mode BN folded into the Linear weights/biases
# ----------------------------------------------------------------------------
def init_ppmodel_params(key, fea_dim=FEA_DIM, init_dim=INIT_DIM):
    dims = [fea_dim, init_dim, init_dim * 2, init_dim * 4, init_dim * 8]
    keys = jax.random.split(key, 8)

    def bn(k, d):
        kg, kb, km, kv = jax.random.split(k, 4)
        gamma = 0.5 + jax.random.uniform(kg, (d,), jnp.float32)
        beta = 0.1 * jax.random.normal(kb, (d,), jnp.float32)
        mean = 0.1 * jax.random.normal(km, (d,), jnp.float32)
        var = 0.5 + jax.random.uniform(kv, (d,), jnp.float32)
        s = gamma / jnp.sqrt(var + EPS)
        t = beta - mean * s
        return s, t

    def lin(k, din, dout):
        kw, kb = jax.random.split(k)
        w = jax.random.normal(kw, (din, dout), jnp.float32) / jnp.sqrt(din)
        b = 0.1 * jax.random.normal(kb, (dout,), jnp.float32)
        return w, b

    s0, t0 = bn(keys[0], dims[0])
    w1, b1 = lin(keys[1], dims[0], dims[1]); s1, t1 = bn(keys[2], dims[1])
    w2, b2 = lin(keys[3], dims[1], dims[2]); s2, t2 = bn(keys[4], dims[2])
    w3, b3 = lin(keys[5], dims[2], dims[3]); s3, t3 = bn(keys[6], dims[3])
    w4, b4 = lin(keys[7], dims[3], dims[4])

    # fold input BN (bn1) into layer1, and each layer's BN into its Linear
    w1f = (s0[:, None] * w1) * s1[None, :]
    b1f = (t0 @ w1 + b1) * s1 + t1
    w2f = w2 * s2[None, :]; b2f = b2 * s2 + t2
    w3f = w3 * s3[None, :]; b3f = b3 * s3 + t3

    def row(v):
        return v.reshape(1, -1).astype(jnp.float32)

    # first layer kept f32 (full-precision input normalization); rest bf16 operands
    return (w1f.astype(jnp.float32), row(b1f),
            w2f.astype(jnp.bfloat16), row(b2f),
            w3f.astype(jnp.bfloat16), row(b3f),
            w4.astype(jnp.bfloat16), row(b4))


# ----------------------------------------------------------------------------
# BEV model stand-in
# ----------------------------------------------------------------------------
def bev_model_stub(out_nchw, res_nchw):
    # TODO(synk): BEV_net is an externally injected sub-module (not defined in this
    # file); use identity so (moving_output, movable_output) mirror its inputs.
    return out_nchw, res_nchw


# ----------------------------------------------------------------------------
# Full ptBEVnet forward
# ----------------------------------------------------------------------------
def pt_bev_forward(pt_fea_list, xyz_ind_list, params):
    B = len(pt_fea_list)
    H, W = GRID_SIZE

    # host/XLA glue: concat features, flat voxel ids (b*H*W + h*W + w)
    cat_fea = jnp.concatenate([jnp.asarray(f, jnp.float32) for f in pt_fea_list],
                              axis=0)
    flat_ids = np.concatenate(
        [b * H * W + np.asarray(ind)[:, 0].astype(np.int64) * W
         + np.asarray(ind)[:, 1].astype(np.int64)
         for b, ind in enumerate(xyz_ind_list)]).astype(np.int32)
    assert flat_ids.min() >= 0 and flat_ids.max() < B * H * W, "voxel index out of range"

    n, cat_dim = cat_fea.shape
    res_dim = cat_dim - FEA_DIM
    assert 0 < res_dim <= RES_PAD

    # sort points by flat voxel id (max is permutation-invariant) so the in-kernel
    # per-sub-block early-out skips most (voxel sub-block, point tile) pairs.
    perm = np.argsort(flat_ids, kind="stable")
    flat_ids = flat_ids[perm]
    cat_fea = jnp.take(cat_fea, jnp.asarray(perm), axis=0)

    pp_tile = min(PP_TILE_N, _round_up(n, SEG_N_TILE))
    n_pad = _round_up(n, pp_tile)
    cat_w = _round_up(cat_dim, 8)
    x_pad = jnp.pad(cat_fea, ((0, n_pad - n), (0, cat_w - cat_dim)))

    ids_pad = np.full((n_pad,), -1, np.int32)   # padded points: id=-1 (never match)
    ids_pad[:n] = flat_ids
    ids_pad = jnp.asarray(ids_pad)

    # PPmodel_in (Pallas MLP kernel): processed (bf16) + residual slab (f32)
    proc, res = ppmodel_forward(x_pad, params, res_dim, pp_tile)

    # fused scatter_max + dense BEV grid + 3x3/stride-1 local max pool
    out_nhwc, res_nhwc = bev_scatter_pool(ids_pad, proc, res, B)

    # permute(0,3,1,2): NHWC -> NCHW for the PyTorch-style BEV_net hand-off (tiny
    # here).  TODO(synk): for a real BEV_net keep NHWC (C=256 lane-dense) end-to-end.
    out_nchw = jnp.transpose(out_nhwc, (0, 3, 1, 2))
    res_nchw = jnp.transpose(res_nhwc[..., :res_dim], (0, 3, 1, 2))

    return bev_model_stub(out_nchw, res_nchw)


if __name__ == "__main__":
    key = jax.random.PRNGKey(0)
    kp, kf, ki = jax.random.split(key, 3)
    params = init_ppmodel_params(kp)

    B = 2
    NPTS = 32
    RES_DIM = 4
    fea_keys = jax.random.split(kf, B)
    ind_keys = jax.random.split(ki, B)
    # each pt_fea[i]: [NPTS, FEA_DIM + RES_DIM]; each xyz_ind[i]: [NPTS, 2] grid indices
    pt_fea = [jax.random.normal(fea_keys[i], (NPTS, FEA_DIM + RES_DIM), jnp.float32)
              for i in range(B)]
    xyz_ind = [np.asarray(jax.random.randint(ind_keys[i], (NPTS, 2), 0, GRID_SIZE[0]),
                          dtype=np.int32)
               for i in range(B)]

    moving_output, movable_output = pt_bev_forward(pt_fea, xyz_ind, params)
    jax.block_until_ready((moving_output, movable_output))
    assert moving_output.shape == (B, POOL_DIM, GRID_SIZE[0], GRID_SIZE[1])
    assert movable_output.shape == (B, RES_DIM, GRID_SIZE[0], GRID_SIZE[1])
    assert bool(jnp.all(jnp.isfinite(moving_output)))
    assert bool(jnp.all(jnp.isfinite(movable_output)))
    print("KERNEL_OK")
</pallas_src>

<mosaic_0001>
module attributes {stable_mosaic.version = 11 : i64} {
  func.func @kernel(%arg0: i32, %arg1: memref<512x8xf32, #tpu.memory_space<vmem>>, %arg2: memref<8x32xf32, #tpu.memory_space<vmem>>, %arg3: memref<1x32xf32, #tpu.memory_space<vmem>>, %arg4: memref<32x64xbf16, #tpu.memory_space<vmem>>, %arg5: memref<1x64xf32, #tpu.memory_space<vmem>>, %arg6: memref<64x128xbf16, #tpu.memory_space<vmem>>, %arg7: memref<1x128xf32, #tpu.memory_space<vmem>>, %arg8: memref<128x256xbf16, #tpu.memory_space<vmem>>, %arg9: memref<1x256xf32, #tpu.memory_space<vmem>>, %arg10: memref<512x256xbf16, #tpu.memory_space<vmem>>, %arg11: memref<512x128xf32, #tpu.memory_space<vmem>>) attributes {dimension_semantics = [#tpu.dimension_semantics<parallel>], iteration_bounds = array<i64: 1>, scalar_prefetch = 0 : i64, scratch_operands = 0 : i64, tpu.core_type = #tpu.core_type<tc>, window_params = [{transform_indices = @transform_0, window_bounds = array<i64: 512, 8>}, {pipeline_mode = #tpu.pipeline_mode<synchronous>, transform_indices = @transform_1, window_bounds = array<i64: 8, 32>}, {pipeline_mode = #tpu.pipeline_mode<synchronous>, transform_indices = @transform_2, window_bounds = array<i64: 1, 32>}, {pipeline_mode = #tpu.pipeline_mode<synchronous>, transform_indices = @transform_3, window_bounds = array<i64: 32, 64>}, {pipeline_mode = #tpu.pipeline_mode<synchronous>, transform_indices = @transform_4, window_bounds = array<i64: 1, 64>}, {pipeline_mode = #tpu.pipeline_mode<synchronous>, transform_indices = @transform_5, window_bounds = array<i64: 64, 128>}, {pipeline_mode = #tpu.pipeline_mode<synchronous>, transform_indices = @transform_6, window_bounds = array<i64: 1, 128>}, {pipeline_mode = #tpu.pipeline_mode<synchronous>, transform_indices = @transform_7, window_bounds = array<i64: 128, 256>}, {pipeline_mode = #tpu.pipeline_mode<synchronous>, transform_indices = @transform_8, window_bounds = array<i64: 1, 256>}, {transform_indices = @transform_9, window_bounds = array<i64: 512, 256>}, {transform_indices = @transform_10, window_bounds = array<i64: 512, 128>}]} {
    %c0 = arith.constant 0 : index
    %c0_0 = arith.constant 0 : index
    %0 = vector.load %arg1[%c0, %c0_0] : memref<512x8xf32, #tpu.memory_space<vmem>>, vector<512x8xf32>
    %c0_1 = arith.constant 0 : index
    %c0_2 = arith.constant 0 : index
    %1 = vector.load %arg2[%c0_1, %c0_2] : memref<8x32xf32, #tpu.memory_space<vmem>>, vector<8x32xf32>
    %cst = arith.constant dense<0.000000e+00> : vector<512x32xf32>
    %2 = tpu.matmul %0, %1, %cst {dimension_numbers = #tpu.dot_dimension_numbers<[1], [0], [0], [1], [0, 0, 1, 1], [], []>} : vector<512x8xf32>, vector<8x32xf32>, vector<512x32xf32> -> vector<512x32xf32>
    %c0_3 = arith.constant 0 : index
    %c0_4 = arith.constant 0 : index
    %3 = vector.load %arg3[%c0_3, %c0_4] : memref<1x32xf32, #tpu.memory_space<vmem>>, vector<1x32xf32>
    %4 = vector.broadcast %3 : vector<1x32xf32> to vector<512x32xf32>
    %5 = arith.addf %2, %4 : vector<512x32xf32>
    %cst_5 = arith.constant 0.000000e+00 : f32
    %6 = vector.broadcast %cst_5 : f32 to vector<512x32xf32>
    %7 = arith.maximumf %5, %6 : vector<512x32xf32>
    %8 = arith.truncf %7 : vector<512x32xf32> to vector<512x32xbf16>
    %c0_6 = arith.constant 0 : index
    %c0_7 = arith.constant 0 : index
    %9 = vector.load %arg4[%c0_6, %c0_7] : memref<32x64xbf16, #tpu.memory_space<vmem>>, vector<32x64xbf16>
    %cst_8 = arith.constant dense<0.000000e+00> : vector<512x64xf32>
    %10 = tpu.matmul %8, %9, %cst_8 {dimension_numbers = #tpu.dot_dimension_numbers<[1], [0], [0], [1], [0, 0, 1, 1], [], []>} : vector<512x32xbf16>, vector<32x64xbf16>, vector<512x64xf32> -> vector<512x64xf32>
    %c0_9 = arith.constant 0 : index
    %c0_10 = arith.constant 0 : index
    %11 = vector.load %arg5[%c0_9, %c0_10] : memref<1x64xf32, #tpu.memory_space<vmem>>, vector<1x64xf32>
    %12 = vector.broadcast %11 : vector<1x64xf32> to vector<512x64xf32>
    %13 = arith.addf %10, %12 : vector<512x64xf32>
    %cst_11 = arith.constant 0.000000e+00 : f32
    %14 = vector.broadcast %cst_11 : f32 to vector<512x64xf32>
    %15 = arith.maximumf %13, %14 : vector<512x64xf32>
    %16 = arith.truncf %15 : vector<512x64xf32> to vector<512x64xbf16>
    %c0_12 = arith.constant 0 : index
    %c0_13 = arith.constant 0 : index
    %17 = vector.load %arg6[%c0_12, %c0_13] : memref<64x128xbf16, #tpu.memory_space<vmem>>, vector<64x128xbf16>
    %cst_14 = arith.constant dense<0.000000e+00> : vector<512x128xf32>
    %18 = tpu.matmul %16, %17, %cst_14 {dimension_numbers = #tpu.dot_dimension_numbers<[1], [0], [0], [1], [0, 0, 1, 1], [], []>} : vector<512x64xbf16>, vector<64x128xbf16>, vector<512x128xf32> -> vector<512x128xf32>
    %c0_15 = arith.constant 0 : index
    %c0_16 = arith.constant 0 : index
    %19 = vector.load %arg7[%c0_15, %c0_16] : memref<1x128xf32, #tpu.memory_space<vmem>>, vector<1x128xf32>
    %20 = vector.broadcast %19 : vector<1x128xf32> to vector<512x128xf32>
    %21 = arith.addf %18, %20 : vector<512x128xf32>
    %cst_17 = arith.constant 0.000000e+00 : f32
    %22 = vector.broadcast %cst_17 : f32 to vector<512x128xf32>
    %23 = arith.maximumf %21, %22 : vector<512x128xf32>
    %24 = arith.truncf %23 : vector<512x128xf32> to vector<512x128xbf16>
    %c0_18 = arith.constant 0 : index
    %c0_19 = arith.constant 0 : index
    %25 = vector.load %arg8[%c0_18, %c0_19] : memref<128x256xbf16, #tpu.memory_space<vmem>>, vector<128x256xbf16>
    %cst_20 = arith.constant dense<0.000000e+00> : vector<512x256xf32>
    %26 = tpu.matmul %24, %25, %cst_20 {dimension_numbers = #tpu.dot_dimension_numbers<[1], [0], [0], [1], [0, 0, 1, 1], [], []>} : vector<512x128xbf16>, vector<128x256xbf16>, vector<512x256xf32> -> vector<512x256xf32>
    %c0_21 = arith.constant 0 : index
    %c0_22 = arith.constant 0 : index
    %27 = vector.load %arg9[%c0_21, %c0_22] : memref<1x256xf32, #tpu.memory_space<vmem>>, vector<1x256xf32>
    %28 = vector.broadcast %27 : vector<1x256xf32> to vector<512x256xf32>
    %29 = arith.addf %26, %28 : vector<512x256xf32>
    %30 = arith.truncf %29 : vector<512x256xf32> to vector<512x256xbf16>
    %c0_23 = arith.constant 0 : index
    %c0_24 = arith.constant 0 : index
    %31 = vector.load %arg10[%c0_23, %c0_24] : memref<512x256xbf16, #tpu.memory_space<vmem>>, vector<512x256xbf16>
    tpu.vector_store %arg10[%c0_23, %c0_24], %30 {strides = array<i32>} : memref<512x256xbf16, #tpu.memory_space<vmem>>, vector<512x256xbf16>,
    %32 = vector.extract_strided_slice %0 {offsets = [0, 3], sizes = [512, 4], strides = [1, 1]} : vector<512x8xf32> to vector<512x4xf32>
    %cst_25 = arith.constant 0.000000e+00 : f32
    %33 = vector.broadcast %cst_25 : f32 to vector<512x124xf32>
    %34 = tpu.concatenate %32, %33 in 1 : vector<512x4xf32>, vector<512x124xf32> -> vector<512x128xf32>
    %c0_26 = arith.constant 0 : index
    %c0_27 = arith.constant 0 : index
    %35 = vector.load %arg11[%c0_26, %c0_27] : memref<512x128xf32, #tpu.memory_space<vmem>>, vector<512x128xf32>
    tpu.vector_store %arg11[%c0_26, %c0_27], %34 {strides = array<i32>} : memref<512x128xf32, #tpu.memory_space<vmem>>, vector<512x128xf32>,
    return
  }
  func.func @transform_0(%arg0: i32) -> (i32, i32) {
    %c0_i32 = arith.constant 0 : i32
    %c0_i32_0 = arith.constant 0 : i32
    return %arg0, %c0_i32 : i32, i32
  }
  func.func @transform_1(%arg0: i32) -> (i32, i32) {
    %c0_i32 = arith.constant 0 : i32
    %c0_i32_0 = arith.constant 0 : i32
    %c0_i32_1 = arith.constant 0 : i32
    return %c0_i32, %c0_i32_0 : i32, i32
  }
  func.func @transform_2(%arg0: i32) -> (i32, i32) {
    %c0_i32 = arith.constant 0 : i32
    %c0_i32_0 = arith.constant 0 : i32
    %c0_i32_1 = arith.constant 0 : i32
    return %c0_i32, %c0_i32_0 : i32, i32
  }
  func.func @transform_3(%arg0: i32) -> (i32, i32) {
    %c0_i32 = arith.constant 0 : i32
    %c0_i32_0 = arith.constant 0 : i32
    %c0_i32_1 = arith.constant 0 : i32
    return %c0_i32, %c0_i32_0 : i32, i32
  }
  func.func @transform_4(%arg0: i32) -> (i32, i32) {
    %c0_i32 = arith.constant 0 : i32
    %c0_i32_0 = arith.constant 0 : i32
    %c0_i32_1 = arith.constant 0 : i32
    return %c0_i32, %c0_i32_0 : i32, i32
  }
  func.func @transform_5(%arg0: i32) -> (i32, i32) {
    %c0_i32 = arith.constant 0 : i32
    %c0_i32_0 = arith.constant 0 : i32
    %c0_i32_1 = arith.constant 0 : i32
    return %c0_i32, %c0_i32_0 : i32, i32
  }
  func.func @transform_6(%arg0: i32) -> (i32, i32) {
    %c0_i32 = arith.constant 0 : i32
    %c0_i32_0 = arith.constant 0 : i32
    %c0_i32_1 = arith.constant 0 : i32
    return %c0_i32, %c0_i32_0 : i32, i32
  }
  func.func @transform_7(%arg0: i32) -> (i32, i32) {
    %c0_i32 = arith.constant 0 : i32
    %c0_i32_0 = arith.constant 0 : i32
    %c0_i32_1 = arith.constant 0 : i32
    return %c0_i32, %c0_i32_0 : i32, i32
  }
  func.func @transform_8(%arg0: i32) -> (i32, i32) {
    %c0_i32 = arith.constant 0 : i32
    %c0_i32_0 = arith.constant 0 : i32
    %c0_i32_1 = arith.constant 0 : i32
    return %c0_i32, %c0_i32_0 : i32, i32
  }
  func.func @transform_9(%arg0: i32) -> (i32, i32) {
    %c0_i32 = arith.constant 0 : i32
    %c0_i32_0 = arith.constant 0 : i32
    return %arg0, %c0_i32 : i32, i32
  }
  func.func @transform_10(%arg0: i32) -> (i32, i32) {
    %c0_i32 = arith.constant 0 : i32
    %c0_i32_0 = arith.constant 0 : i32
    return %arg0, %c0_i32 : i32, i32
  }
}

</mosaic_0001>

<bundles_post_ra>
// kernel: tpu_custom_call.1
= control target key start
LH: loop header
LB: loop body
LE: loop exit
PB: predicated region body
PF: predicated region fallthrough
CT: control target
= control target key end

     0   :  { %16 = vsyncpa [#allocation3], 0  ;;  %vm109_vm0 = vcmask 64512   ;;  %s5126_s0 = inlined_call_operand.vmem [shape: f32[512,8], index: 0, kind: input, shape index: {}]   ;;  %s5127_s1 = inlined_call_operand.vmem [shape: f32[8,32], index: 1, kind: input, shape index: {}]   ;;  %s5128_s2 = inlined_call_operand.vmem [shape: f32[1,32], index: 2, kind: input, shape index: {}]   ;;  %s5129_s3 = inlined_call_operand.vmem [shape: bf16[32,64], index: 3, kind: input, shape index: {}]   ;;  %s5130_s4 = inlined_call_operand.vmem [shape: f32[1,64], index: 4, kind: input, shape index: {}]   ;;  %s5131_s5 = inlined_call_operand.vmem [shape: bf16[64,128], index: 5, kind: input, shape index: {}]   ;;  %s5132_s6 = inlined_call_operand.vmem [shape: f32[1,128], index: 6, kind: input, shape index: {}]   ;;  %s5133_s7 = inlined_call_operand.vmem [shape: bf16[128,256], index: 7, kind: input, shape index: {}]   ;;  %s5134_s8 = inlined_call_operand.vmem [shape: f32[1,256], index: 8, kind: input, shape index: {}]   ;;  %s5135_s9 = inlined_call_operand.hbm [shape: bf16[512,256], index: 9, kind: output, shape index: {0}]   ;;  %s5136_s10 = inlined_call_operand.hbm [shape: f32[512,128], index: 10, kind: output, shape index: {1}]  }
   0x1   :  { %v101_v0 = vld [vmem:[%s5127_s1] sm:$0xff]  ;;  %v38_v2 = vld [vmem:[%s5126_s0 + $0x8] sm:$0xff]  ;;  %v39_v3 = vld [vmem:[%s5126_s0 + $0x10] sm:$0xff] }
   0x2   :  { %v37_v1 = vld [vmem:[%s5126_s0] sm:$0xff]  ;;  %3487 = vmatprep.subr.mxu0 %v101_v0  ;;  %v40_v4 = vld [vmem:[%s5126_s0 + $0x18] sm:$0xff]  ;;  %v42_v6 = vld [vmem:[%s5126_s0 + $0x28] sm:$0xff] }
   0x3   :  { %3489 = vmatprep.mubr.msk.f32.mxu0 %vm109_vm0, %v37_v1  ;;  %3488 = vmatpush3.msra.mxu0 %v101_v0  ;;  %v41_v5 = vld [vmem:[%s5126_s0 + $0x20] sm:$0xff]  ;;  %v43_v7 = vld [vmem:[%s5126_s0 + $0x30] sm:$0xff]  ;;  %v44_v9 = vld [vmem:[%s5126_s0 + $0x38] sm:$0xff] }
   0x4   :  { %3490 = vmatmul.mubr.msk.f32.vlgmr.msra.gmra.mrb[0].mxu0 %vm109_vm0, %v38_v2  ;;  %v3735_v8 = vld [vmem:[%s5129_s3] sm:$0xff]   ;;  %v46_v11 = vld [vmem:[%s5126_s0 + $0x48] sm:$0xff]  ;;  %v47_v13 = vld [vmem:[%s5126_s0 + $0x50] sm:$0xff] }
   0x5   :  { %3492 = vmatprep.mubr.msk.f32.mxu0 %vm109_vm0, %v39_v3  ;;  %3585 = vmatprep.subr.bf16.mxu0 %v3735_v8  ;;  %v45_v10 = vld [vmem:[%s5126_s0 + $0x40] sm:$0xff]  ;;  %v3736_v12 = vld [vmem:[%s5129_s3 + $0x8] sm:$0xff]   ;;  %v48_v14 = vld [vmem:[%s5126_s0 + $0x58] sm:$0xff] }
   0x6   :  { %3586 = vmatpush3.bf16.msra.mxu0 %v3735_v8  ;;  %3725 = vmatprep.subr.bf16.mxu1 %v3735_v8  ;;  %v49_v15 = vld [vmem:[%s5126_s0 + $0x60] sm:$0xff]  ;;  %v50_v16 = vld [vmem:[%s5126_s0 + $0x68] sm:$0xff]  ;;  %v51_v17 = vld [vmem:[%s5126_s0 + $0x70] sm:$0xff] }
   0x7   :  { %3727 = vmatpush3.bf16.msra.mxu1 %v3735_v8  ;;  %3587 = vmatprep.subr.bf16.mxu0 %v3736_v12  ;;  %v52_v18 = vld [vmem:[%s5126_s0 + $0x78] sm:$0xff]  ;;  %v53_v19 = vld [vmem:[%s5126_s0 + $0x80] sm:$0xff] }
   0x8   :  { %3493 = vmatmul.mubr.msk.f32.gmra.mrb[2].mxu0 %vm109_vm0, %v40_v4  ;;  %3726 = vmatprep.subr.bf16.mxu1 %v3736_v12 }
   0x9   :  { %3495 = vmatprep.mubr.msk.f32.mxu0 %vm109_vm0, %v41_v5 }
   0xa   :  { %3588 = vmatpush3.bf16.msra.mxu0 %v3736_v12 }
   0xb   :  { %3728 = vmatpush3.bf16.msra.mxu1 %v3736_v12 }
   0xc   :  { %3496 = vmatmul.mubr.msk.f32.gmra.mrb[4].mxu0 %vm109_vm0, %v42_v6 }
   0xd   :  { %3498 = vmatprep.mubr.msk.f32.mxu0 %vm109_vm0, %v43_v7 }
  0x10   :  { %3499 = vmatmul.mubr.msk.f32.gmra.mrb[6].mxu0 %vm109_vm0, %v44_v9 }
  0x11   :  { %3501 = vmatprep.mubr.msk.f32.mxu0 %vm109_vm0, %v45_v10 }
  0x14   :  { %3502 = vmatmul.mubr.msk.f32.gmra.mrb[8].mxu0 %vm109_vm0, %v46_v11 }
  0x15   :  { %3504 = vmatprep.mubr.msk.f32.mxu0 %vm109_vm0, %v47_v13 }
  0x18   :  { %3505 = vmatmul.mubr.msk.f32.gmra.mrb[10].mxu0 %vm109_vm0, %v48_v14 }
  0x19   :  { %3507 = vmatprep.mubr.msk.f32.mxu0 %vm109_vm0, %v49_v15 }
  0x1c   :  { %3508 = vmatmul.mubr.msk.f32.gmra.mrb[12].mxu0 %vm109_vm0, %v50_v16 }
  0x1d   :  { %3510 = vmatprep.mubr.msk.f32.mxu0 %vm109_vm0, %v51_v17 }
  0x20   :  { %3511 = vmatmul.mubr.msk.f32.gmra.mrb[14].mxu0 %vm109_vm0, %v52_v18 }
  0x21   :  { %17 = vsyncpa [#allocation5], 0  ;;  %3513 = vmatprep.mubr.msk.f32.mxu0 %vm109_vm0, %v53_v19  ;;  %v54_v20 = vld [vmem:[%s5126_s0 + $0x88] sm:$0xff]  ;;  %v55_v21 = vld [vmem:[%s5126_s0 + $0x90] sm:$0xff]  ;;  %vm806_vm1 = vcmask 261120   ;;  %vm1327_vm2 = vcmask 523264  }
  0x22   :  { %v56_v22 = vld [vmem:[%s5126_s0 + $0x98] sm:$0xff]  ;;  %v57_v23 = vld [vmem:[%s5126_s0 + $0xa0] sm:$0xff]  ;;  %v58_v24 = vld [vmem:[%s5126_s0 + $0xa8] sm:$0xff]  ;;  %s3878_s13 = smov 125   ;;  %vm2910_vm3 = vcmask 31744  }
  0x23   :  { %v59_v25 = vld [vmem:[%s5126_s0 + $0xb0] sm:$0xff]  ;;  %v60_v26 = vld [vmem:[%s5126_s0 + $0xb8] sm:$0xff]  ;;  %v61_v27 = vld [vmem:[%s5126_s0 + $0xc0] sm:$0xff] }
  0x24   :  { %3514 = vmatmul.mubr.msk.f32.gmra.mrb[16].mxu0 %vm109_vm0, %v54_v20  ;;  %v62_v28 = vld [vmem:[%s5126_s0 + $0xc8] sm:$0xff]  ;;  %v63_v29 = vld [vmem:[%s5126_s0 + $0xd0] sm:$0xff]  ;;  %v64_v30 = vld [vmem:[%s5126_s0 + $0xd8] sm:$0xff] }
  0x25   :  { %3516 = vmatprep.mubr.msk.f32.mxu0 %vm109_vm0, %v55_v21  ;;  %v65_v31 = vld [vmem:[%s5126_s0 + $0xe0] sm:$0xff]  ;;  %v66_v32 = vld [vmem:[%s5126_s0 + $0xe8] sm:$0xff]  ;;  %v67_v33 = vld [vmem:[%s5126_s0 + $0xf0] sm:$0xff] }
  0x26   :  { %v68_v34 = vld [vmem:[%s5126_s0 + $0xf8] sm:$0xff]  ;;  %v69_v35 = vld [vmem:[%s5126_s0 + $0x100] sm:$0xff]  ;;  %v70_v36 = vld [vmem:[%s5126_s0 + $0x108] sm:$0xff] }
  0x27   :  { %v71_v37 = vld [vmem:[%s5126_s0 + $0x110] sm:$0xff]  ;;  %v72_v38 = vld [vmem:[%s5126_s0 + $0x118] sm:$0xff]  ;;  %v73_v39 = vld [vmem:[%s5126_s0 + $0x120] sm:$0xff] }
  0x28   :  { %3517 = vmatmul.mubr.msk.f32.gmra.mrb[18].mxu0 %vm109_vm0, %v56_v22  ;;  %v74_v40 = vld [vmem:[%s5126_s0 + $0x128] sm:$0xff]  ;;  %v75_v41 = vld [vmem:[%s5126_s0 + $0x130] sm:$0xff]  ;;  %v76_v42 = vld [vmem:[%s5126_s0 + $0x138] sm:$0xff] }
  0x29   :  { %3519 = vmatprep.mubr.msk.f32.mxu0 %vm109_vm0, %v57_v23  ;;  %v77_v43 = vld [vmem:[%s5126_s0 + $0x140] sm:$0xff]  ;;  %v78_v44 = vld [vmem:[%s5126_s0 + $0x148] sm:$0xff]  ;;  %v79_v45 = vld [vmem:[%s5126_s0 + $0x150] sm:$0xff] }
  0x2a   :  { %v80_v46 = vld [vmem:[%s5126_s0 + $0x158] sm:$0xff]  ;;  %v81_v47 = vld [vmem:[%s5126_s0 + $0x160] sm:$0xff]  ;;  %v82_v48 = vld [vmem:[%s5126_s0 + $0x168] sm:$0xff] }
  0x2b   :  { %v83_v49 = vld [vmem:[%s5126_s0 + $0x170] sm:$0xff]  ;;  %v84_v50 = vld [vmem:[%s5126_s0 + $0x178] sm:$0xff]  ;;  %v85_v51 = vld [vmem:[%s5126_s0 + $0x180] sm:$0xff] }
  0x2c   :  { %3520 = vmatmul.mubr.msk.f32.gmra.mrb[20].mxu0 %vm109_vm0, %v58_v24  ;;  %v86_v52 = vld [vmem:[%s5126_s0 + $0x188] sm:$0xff]  ;;  %v87_v53 = vld [vmem:[%s5126_s0 + $0x190] sm:$0xff]  ;;  %v88_v54 = vld [vmem:[%s5126_s0 + $0x198] sm:$0xff] }
  0x2d   :  { %3522 = vmatprep.mubr.msk.f32.mxu0 %vm109_vm0, %v59_v25  ;;  %v89_v55 = vld [vmem:[%s5126_s0 + $0x1a0] sm:$0xff]  ;;  %v90_v56 = vld [vmem:[%s5126_s0 + $0x1a8] sm:$0xff]  ;;  %v91_v57 = vld [vmem:[%s5126_s0 + $0x1b0] sm:$0xff] }
  0x2e   :  { %v92_v58 = vld [vmem:[%s5126_s0 + $0x1b8] sm:$0xff]  ;;  %v93_v59 = vld [vmem:[%s5126_s0 + $0x1c0] sm:$0xff]  ;;  %v94_v60 = vld [vmem:[%s5126_s0 + $0x1c8] sm:$0xff] }
  0x2f   :  { %v95_v61 = vld [vmem:[%s5126_s0 + $0x1d0] sm:$0xff]  ;;  %v96_v62 = vld [vmem:[%s5126_s0 + $0x1d8] sm:$0xff]  ;;  %v97_v63 = vld [vmem:[%s5126_s0 + $0x1e0] sm:$0xff] }
  0x30   :  { %3523 = vmatmul.mubr.msk.f32.gmra.mrb[22].mxu0 %vm109_vm0, %v60_v26  ;;  %v98_v0 = vld [vmem:[%s5126_s0 + $0x1e8] sm:$0xff]  ;;  %v99_v1 = vld [vmem:[%s5126_s0 + $0x1f0] sm:$0xff]  ;;  %v100_v2 = vld [vmem:[%s5126_s0 + $0x1f8] sm:$0xff] }
  0x31   :  { %3525 = vmatprep.mubr.msk.f32.mxu0 %vm109_vm0, %v61_v27  ;;  %v3737_v3 = vld [vmem:[%s5131_s5] sm:$0xff]   ;;  %v3738_v23 = vld [vmem:[%s5131_s5 + $0x8] sm:$0xff]  }
  0x32   :  { %3653 = vmatprep.subr.bf16.mxu0 %v3737_v3  ;;  %v4209_v4 = vld [vmem:[%s5128_s2] ss:$0 sm:$0xff] }
  0x34   :  { %3526 = vmatmul.mubr.msk.f32.gmra.mrb[24].mxu0 %vm109_vm0, %v62_v28 }
  0x35   :  { %3528 = vmatprep.mubr.msk.f32.mxu0 %vm109_vm0, %v63_v29 }
  0x38   :  { %3529 = vmatmul.mubr.msk.f32.gmra.mrb[26].mxu0 %vm109_vm0, %v64_v30 }
  0x39   :  { %3531 = vmatprep.mubr.msk.f32.mxu0 %vm109_vm0, %v65_v31  ;;  %v3739_v31 = vld [vmem:[%s5131_s5 + $0x10] sm:$0xff]  }
  0x3c   :  { %3532 = vmatmul.mubr.msk.f32.gmra.mrb[28].mxu0 %vm109_vm0, %v66_v32 }
  0x3d   :  { %3534 = vmatprep.mubr.msk.f32.mxu0 %vm109_vm0, %v67_v33 }
  0x40   :  { %3535 = vmatmul.mubr.msk.f32.gmra.mrb[30].mxu0 %vm109_vm0, %v68_v34 }
  0x41   :  { %3537 = vmatprep.mubr.msk.f32.mxu0 %vm109_vm0, %v69_v35 }
  0x44   :  { %3538 = vmatmul.mubr.msk.f32.gmra.mrb[32].mxu0 %vm109_vm0, %v70_v36 }
  0x45   :  { %3540 = vmatprep.mubr.msk.f32.mxu0 %vm109_vm0, %v71_v37 }
  0x48   :  { %3541 = vmatmul.mubr.msk.f32.gmra.mrb[34].mxu0 %vm109_vm0, %v72_v38 }
  0x49   :  { %3543 = vmatprep.mubr.msk.f32.mxu0 %vm109_vm0, %v73_v39  ;;  %v3740_v39 = vld [vmem:[%s5131_s5 + $0x18] sm:$0xff]  }
  0x4c   :  { %3544 = vmatmul.mubr.msk.f32.gmra.mrb[36].mxu0 %vm109_vm0, %v74_v40 }
  0x4d   :  { %3546 = vmatprep.mubr.msk.f32.mxu0 %vm109_vm0, %v75_v41 }
  0x50   :  { %3547 = vmatmul.mubr.msk.f32.gmra.mrb[38].mxu0 %vm109_vm0, %v76_v42 }
  0x51   :  { %3549 = vmatprep.mubr.msk.f32.mxu0 %vm109_vm0, %v77_v43 }
  0x54   :  { %3550 = vmatmul.mubr.msk.f32.gmra.mrb[40].mxu0 %vm109_vm0, %v78_v44 }
  0x55   :  { %3552 = vmatprep.mubr.msk.f32.mxu0 %vm109_vm0, %v79_v45 }
  0x58   :  { %3553 = vmatmul.mubr.msk.f32.gmra.mrb[42].mxu0 %vm109_vm0, %v80_v46 }
  0x59   :  { %3555 = vmatprep.mubr.msk.f32.mxu0 %vm109_vm0, %v81_v47 }
  0x5c   :  { %3556 = vmatmul.mubr.msk.f32.gmra.mrb[44].mxu0 %vm109_vm0, %v82_v48 }
  0x5d   :  { %3558 = vmatprep.mubr.msk.f32.mxu0 %vm109_vm0, %v83_v49 }
  0x60   :  { %3559 = vmatmul.mubr.msk.f32.gmra.mrb[46].mxu0 %vm109_vm0, %v84_v50 }
  0x61   :  { %3561 = vmatprep.mubr.msk.f32.mxu0 %vm109_vm0, %v85_v51 }
  0x64   :  { %3562 = vmatmul.mubr.msk.f32.gmra.mrb[48].mxu0 %vm109_vm0, %v86_v52 }
  0x65   :  { %3564 = vmatprep.mubr.msk.f32.mxu0 %vm109_vm0, %v87_v53 }
  0x68   :  { %3565 = vmatmul.mubr.msk.f32.gmra.mrb[50].mxu0 %vm109_vm0, %v88_v54 }
  0x69   :  { %3567 = vmatprep.mubr.msk.f32.mxu0 %vm109_vm0, %v89_v55 }
  0x6c   :  { %3568 = vmatmul.mubr.msk.f32.gmra.mrb[52].mxu0 %vm109_vm0, %v90_v56 }
  0x6d   :  { %3570 = vmatprep.mubr.msk.f32.mxu0 %vm109_vm0, %v91_v57 }
  0x70   :  { %3571 = vmatmul.mubr.msk.f32.gmra.mrb[54].mxu0 %vm109_vm0, %v92_v58 }
  0x71   :  { %3573 = vmatprep.mubr.msk.f32.mxu0 %vm109_vm0, %v93_v59 }
  0x74   :  { %3574 = vmatmul.mubr.msk.f32.gmra.mrb[56].mxu0 %vm109_vm0, %v94_v60 }
  0x75   :  { %3576 = vmatprep.mubr.msk.f32.mxu0 %vm109_vm0, %v95_v61 }
  0x78   :  { %3577 = vmatmul.mubr.msk.f32.gmra.mrb[58].mxu0 %vm109_vm0, %v96_v62 }
  0x79   :  { %3579 = vmatprep.mubr.msk.f32.mxu0 %vm109_vm0, %v97_v63 }
  0x7c   :  { %3580 = vmatmul.mubr.msk.f32.gmra.mrb[60].mxu0 %vm109_vm0, %v98_v0 }
  0x7d   :  { %3582 = vmatprep.mubr.msk.f32.mxu0 %vm109_vm0, %v99_v1 }
  0x80   :  { %3583 = vmatmul.mubr.msk.f32.gmra.mrb[62].mxu0 %vm109_vm0, %v100_v2 }
  0xd7   :  { %v3491_v5 = vpop.f32.mrb[0].mxu0 }
  0xd8   :  { %v374_v6 = vadd.f32 %v3491_v5, %v4209_v4  ;;  %v368_v7 = vpop.f32.mrb[1].mxu0 }
  0xd9   :  { %v369_v8 = vadd.f32 %v4209_v4, %v368_v7 }
  0xda   :  { %v688_v9 = vmax.f32 %v374_v6, 0.0 }
  0xdb   :  { %v687_v10 = vmax.f32 %v369_v8, 0.0  ;;  %v3494_v11 = vpop.f32.mrb[2].mxu0 }
  0xdc   :  { %v384_v12 = vadd.f32 %v3494_v11, %v4209_v4  ;;  %v378_v13 = vpop.f32.mrb[3].mxu0 }
  0xdd   :  { %v751_v14 = vpack.c.bf16 %v688_v9, %v687_v10  ;;  %v379_v15 = vadd.f32 %v4209_v4, %v378_v13 }
  0xde   :  { %v690_v16 = vmax.f32 %v384_v12, 0.0 }
  0xdf   :  { %v689_v17 = vmax.f32 %v379_v15, 0.0  ;;  %3589 = vmatprep.mubr.msk.bf16.mxu0 %vm806_vm1, %v751_v14  ;;  %v3497_v18 = vpop.f32.mrb[4].mxu0 }
  0xe0   :  { %v394_v19 = vadd.f32 %v3497_v18, %v4209_v4  ;;  %v388_v20 = vpop.f32.mrb[5].mxu0 }
  0xe1   :  { %v752_v21 = vpack.c.bf16 %v690_v16, %v689_v17  ;;  %v389_v22 = vadd.f32 %v4209_v4, %v388_v20 }
  0xe2   :  { %v692_v24 = vmax.f32 %v394_v19, 0.0 }
  0xe3   :  { %v691_v25 = vmax.f32 %v389_v22, 0.0  ;;  %v3500_v26 = vpop.f32.mrb[6].mxu0  ;;  %3590 = vmatmul.mubr.msk.bf16.vlgmr.msra.gmra.mrb[64].mxu0 %vm806_vm1, %v752_v21 }
  0xe4   :  { %v404_v27 = vadd.f32 %v3500_v26, %v4209_v4  ;;  %v398_v28 = vpop.f32.mrb[7].mxu0  ;;  %3654 = vmatpush3.bf16.msra.mxu0 %v3737_v3 }
  0xe5   :  { %v753_v29 = vpack.c.bf16 %v692_v24, %v691_v25  ;;  %v399_v30 = vadd.f32 %v4209_v4, %v398_v28  ;;  %3655 = vmatprep.subr.bf16.mxu0 %v3738_v23 }
  0xe6   :  { %v694_v32 = vmax.f32 %v404_v27, 0.0 }
  0xe7   :  { %v693_v33 = vmax.f32 %v399_v30, 0.0  ;;  %3593 = vmatprep.mubr.msk.bf16.mxu0 %vm806_vm1, %v753_v29  ;;  %v3503_v34 = vpop.f32.mrb[8].mxu0 }
  0xe8   :  { %v414_v35 = vadd.f32 %v3503_v34, %v4209_v4  ;;  %v408_v36 = vpop.f32.mrb[9].mxu0  ;;  %3656 = vmatpush3.bf16.msra.mxu0 %v3738_v23 }
  0xe9   :  { %v754_v37 = vpack.c.bf16 %v694_v32, %v693_v33  ;;  %v409_v38 = vadd.f32 %v4209_v4, %v408_v36  ;;  %3657 = vmatprep.subr.bf16.mxu0 %v3739_v31 }
  0xea   :  { %v696_v40 = vmax.f32 %v414_v35, 0.0 }
  0xeb   :  { %3594 = vmatmul.mubr.msk.bf16.gmra.mrb[68].mxu0 %vm806_vm1, %v754_v37  ;;  %v695_v41 = vmax.f32 %v409_v38, 0.0  ;;  %v3506_v42 = vpop.f32.mrb[10].mxu0 }
  0xec   :  { %v424_v43 = vadd.f32 %v3506_v42, %v4209_v4  ;;  %v418_v44 = vpop.f32.mrb[11].mxu0  ;;  %3658 = vmatpush3.bf16.msra.mxu0 %v3739_v31 }
  0xed   :  { %v755_v45 = vpack.c.bf16 %v696_v40, %v695_v41  ;;  %v419_v46 = vadd.f32 %v4209_v4, %v418_v44  ;;  %3659 = vmatprep.subr.bf16.mxu0 %v3740_v39 }
  0xee   :  { %v698_v47 = vmax.f32 %v424_v43, 0.0 }
  0xef   :  { %v697_v48 = vmax.f32 %v419_v46, 0.0  ;;  %3597 = vmatprep.mubr.msk.bf16.mxu0 %vm806_vm1, %v755_v45  ;;  %v3509_v49 = vpop.f32.mrb[12].mxu0 }
  0xf0   :  { %v434_v50 = vadd.f32 %v3509_v49, %v4209_v4  ;;  %v428_v51 = vpop.f32.mrb[13].mxu0  ;;  %3660 = vmatpush3.bf16.msra.mxu0 %v3740_v39 }
  0xf1   :  { %v756_v52 = vpack.c.bf16 %v698_v47, %v697_v48  ;;  %v429_v53 = vadd.f32 %v4209_v4, %v428_v51 }
  0xf2   :  { %v700_v54 = vmax.f32 %v434_v50, 0.0 }
  0xf3   :  { %3598 = vmatmul.mubr.msk.bf16.gmra.mrb[72].mxu0 %vm806_vm1, %v756_v52  ;;  %v699_v55 = vmax.f32 %v429_v53, 0.0  ;;  %v3512_v56 = vpop.f32.mrb[14].mxu0 }
  0xf4   :  { %v444_v57 = vadd.f32 %v3512_v56, %v4209_v4  ;;  %v438_v58 = vpop.f32.mrb[15].mxu0 }
  0xf5   :  { %v757_v59 = vpack.c.bf16 %v700_v54, %v699_v55  ;;  %v439_v60 = vadd.f32 %v4209_v4, %v438_v58 }
  0xf6   :  { %v702_v61 = vmax.f32 %v444_v57, 0.0 }
  0xf7   :  { %v701_v62 = vmax.f32 %v439_v60, 0.0  ;;  %3601 = vmatprep.mubr.msk.bf16.mxu0 %vm806_vm1, %v757_v59  ;;  %v3515_v63 = vpop.f32.mrb[16].mxu0 }
  0xf8   :  { %v454_v0 = vadd.f32 %v3515_v63, %v4209_v4  ;;  %v448_v1 = vpop.f32.mrb[17].mxu0 }
  0xf9   :  { %v758_v2 = vpack.c.bf16 %v702_v61, %v701_v62  ;;  %v449_v3 = vadd.f32 %v4209_v4, %v448_v1 }
  0xfa   :  { %v704_v5 = vmax.f32 %v454_v0, 0.0 }
  0xfb   :  { %3602 = vmatmul.mubr.msk.bf16.gmra.mrb[76].mxu0 %vm806_vm1, %v758_v2  ;;  %v703_v6 = vmax.f32 %v449_v3, 0.0  ;;  %v3518_v7 = vpop.f32.mrb[18].mxu0 }
  0xfc   :  { %v464_v8 = vadd.f32 %v3518_v7, %v4209_v4  ;;  %v458_v9 = vpop.f32.mrb[19].mxu0 }
  0xfd   :  { %v759_v10 = vpack.c.bf16 %v704_v5, %v703_v6  ;;  %v459_v11 = vadd.f32 %v4209_v4, %v458_v9 }
  0xfe   :  { %v706_v12 = vmax.f32 %v464_v8, 0.0 }
  0xff   :  { %v705_v13 = vmax.f32 %v459_v11, 0.0  ;;  %3605 = vmatprep.mubr.msk.bf16.mxu0 %vm806_vm1, %v759_v10  ;;  %v3521_v14 = vpop.f32.mrb[20].mxu0 }
 0x100   :  { %v474_v15 = vadd.f32 %v3521_v14, %v4209_v4  ;;  %v468_v16 = vpop.f32.mrb[21].mxu0 }
 0x101   :  { %v760_v17 = vpack.c.bf16 %v706_v12, %v705_v13  ;;  %v469_v18 = vadd.f32 %v4209_v4, %v468_v16 }
 0x102   :  { %v708_v19 = vmax.f32 %v474_v15, 0.0 }
 0x103   :  { %3606 = vmatmul.mubr.msk.bf16.gmra.mrb[80].mxu0 %vm806_vm1, %v760_v17  ;;  %v707_v20 = vmax.f32 %v469_v18, 0.0  ;;  %v3524_v21 = vpop.f32.mrb[22].mxu0 }
 0x104   :  { %v484_v22 = vadd.f32 %v3524_v21, %v4209_v4  ;;  %v478_v23 = vpop.f32.mrb[23].mxu0 }
 0x105   :  { %v761_v24 = vpack.c.bf16 %v708_v19, %v707_v20  ;;  %v479_v25 = vadd.f32 %v4209_v4, %v478_v23 }
 0x106   :  { %v710_v26 = vmax.f32 %v484_v22, 0.0 }
 0x107   :  { %v709_v27 = vmax.f32 %v479_v25, 0.0  ;;  %3609 = vmatprep.mubr.msk.bf16.mxu0 %vm806_vm1, %v761_v24  ;;  %v3527_v28 = vpop.f32.mrb[24].mxu0 }
 0x108   :  { %v494_v29 = vadd.f32 %v3527_v28, %v4209_v4  ;;  %v488_v30 = vpop.f32.mrb[25].mxu0 }
 0x109   :  { %v762_v31 = vpack.c.bf16 %v710_v26, %v709_v27  ;;  %v489_v32 = vadd.f32 %v4209_v4, %v488_v30 }
 0x10a   :  { %v712_v33 = vmax.f32 %v494_v29, 0.0 }
 0x10b   :  { %3610 = vmatmul.mubr.msk.bf16.gmra.mrb[84].mxu0 %vm806_vm1, %v762_v31  ;;  %v711_v34 = vmax.f32 %v489_v32, 0.0  ;;  %v3530_v35 = vpop.f32.mrb[26].mxu0 }
 0x10c   :  { %v504_v36 = vadd.f32 %v3530_v35, %v4209_v4  ;;  %v498_v37 = vpop.f32.mrb[27].mxu0 }
 0x10d   :  { %v763_v38 = vpack.c.bf16 %v712_v33, %v711_v34  ;;  %v499_v39 = vadd.f32 %v4209_v4, %v498_v37 }
 0x10e   :  { %v714_v40 = vmax.f32 %v504_v36, 0.0 }
 0x10f   :  { %v713_v41 = vmax.f32 %v499_v39, 0.0  ;;  %3613 = vmatprep.mubr.msk.bf16.mxu0 %vm806_vm1, %v763_v38  ;;  %v3533_v42 = vpop.f32.mrb[28].mxu0 }
 0x110   :  { %v514_v43 = vadd.f32 %v3533_v42, %v4209_v4  ;;  %v508_v44 = vpop.f32.mrb[29].mxu0 }
 0x111   :  { %v764_v45 = vpack.c.bf16 %v714_v40, %v713_v41  ;;  %v509_v46 = vadd.f32 %v4209_v4, %v508_v44 }
 0x112   :  { %v716_v47 = vmax.f32 %v514_v43, 0.0 }
 0x113   :  { %3614 = vmatmul.mubr.msk.bf16.gmra.mrb[88].mxu0 %vm806_vm1, %v764_v45  ;;  %v715_v48 = vmax.f32 %v509_v46, 0.0  ;;  %v3536_v49 = vpop.f32.mrb[30].mxu0 }
 0x114   :  { %v524_v50 = vadd.f32 %v3536_v49, %v4209_v4  ;;  %v518_v51 = vpop.f32.mrb[31].mxu0 }
 0x115   :  { %v765_v52 = vpack.c.bf16 %v716_v47, %v715_v48  ;;  %v519_v53 = vadd.f32 %v4209_v4, %v518_v51 }
 0x116   :  { %v718_v54 = vmax.f32 %v524_v50, 0.0 }
 0x117   :  { %v717_v55 = vmax.f32 %v519_v53, 0.0  ;;  %3617 = vmatprep.mubr.msk.bf16.mxu0 %vm806_vm1, %v765_v52  ;;  %v3539_v56 = vpop.f32.mrb[32].mxu0 }
 0x118   :  { %v534_v57 = vadd.f32 %v3539_v56, %v4209_v4  ;;  %v528_v58 = vpop.f32.mrb[33].mxu0 }
 0x119   :  { %v766_v59 = vpack.c.bf16 %v718_v54, %v717_v55  ;;  %v529_v60 = vadd.f32 %v4209_v4, %v528_v58 }
 0x11a   :  { %v720_v61 = vmax.f32 %v534_v57, 0.0 }
 0x11b   :  { %3618 = vmatmul.mubr.msk.bf16.gmra.mrb[92].mxu0 %vm806_vm1, %v766_v59  ;;  %v719_v62 = vmax.f32 %v529_v60, 0.0  ;;  %v3542_v63 = vpop.f32.mrb[34].mxu0 }
 0x11c   :  { %v544_v0 = vadd.f32 %v3542_v63, %v4209_v4  ;;  %v538_v1 = vpop.f32.mrb[35].mxu0 }
 0x11d   :  { %v539_v2 = vadd.f32 %v4209_v4, %v538_v1  ;;  %v767_v3 = vpack.c.bf16 %v720_v61, %v719_v62 }
 0x11e   :  { %v722_v5 = vmax.f32 %v544_v0, 0.0 }
 0x11f   :  { %v721_v6 = vmax.f32 %v539_v2, 0.0  ;;  %3621 = vmatprep.mubr.msk.bf16.mxu1 %vm806_vm1, %v767_v3  ;;  %v3545_v7 = vpop.f32.mrb[36].mxu0 }
 0x120   :  { %v554_v8 = vadd.f32 %v3545_v7, %v4209_v4  ;;  %v548_v9 = vpop.f32.mrb[37].mxu0 }
 0x121   :  { %v768_v10 = vpack.c.bf16 %v722_v5, %v721_v6  ;;  %v549_v11 = vadd.f32 %v4209_v4, %v548_v9 }
 0x122   :  { %v724_v12 = vmax.f32 %v554_v8, 0.0 }
 0x123   :  { %3622 = vmatmul.mubr.msk.bf16.vlgmr.msra.gmra.mrb[0].mxu1 %vm806_vm1, %v768_v10  ;;  %v723_v13 = vmax.f32 %v549_v11, 0.0  ;;  %v3548_v14 = vpop.f32.mrb[38].mxu0 }
 0x124   :  { %v564_v15 = vadd.f32 %v3548_v14, %v4209_v4  ;;  %v558_v16 = vpop.f32.mrb[39].mxu0 }
 0x125   :  { %v769_v17 = vpack.c.bf16 %v724_v12, %v723_v13  ;;  %v559_v18 = vadd.f32 %v4209_v4, %v558_v16 }
 0x126   :  { %v726_v19 = vmax.f32 %v564_v15, 0.0 }
 0x127   :  { %v725_v20 = vmax.f32 %v559_v18, 0.0  ;;  %3625 = vmatprep.mubr.msk.bf16.mxu1 %vm806_vm1, %v769_v17  ;;  %v3551_v21 = vpop.f32.mrb[40].mxu0 }
 0x128   :  { %v574_v22 = vadd.f32 %v3551_v21, %v4209_v4  ;;  %v568_v23 = vpop.f32.mrb[41].mxu0 }
 0x129   :  { %v770_v24 = vpack.c.bf16 %v726_v19, %v725_v20  ;;  %v569_v25 = vadd.f32 %v4209_v4, %v568_v23 }
 0x12a   :  { %v728_v26 = vmax.f32 %v574_v22, 0.0 }
 0x12b   :  { %3626 = vmatmul.mubr.msk.bf16.gmra.mrb[4].mxu1 %vm806_vm1, %v770_v24  ;;  %v727_v27 = vmax.f32 %v569_v25, 0.0  ;;  %v3554_v28 = vpop.f32.mrb[42].mxu0 }
 0x12c   :  { %v584_v29 = vadd.f32 %v3554_v28, %v4209_v4  ;;  %v578_v30 = vpop.f32.mrb[43].mxu0 }
 0x12d   :  { %v771_v31 = vpack.c.bf16 %v728_v26, %v727_v27  ;;  %v579_v32 = vadd.f32 %v4209_v4, %v578_v30 }
 0x12e   :  { %v730_v33 = vmax.f32 %v584_v29, 0.0 }
 0x12f   :  { %v729_v34 = vmax.f32 %v579_v32, 0.0  ;;  %3629 = vmatprep.mubr.msk.bf16.mxu1 %vm806_vm1, %v771_v31  ;;  %v3557_v35 = vpop.f32.mrb[44].mxu0 }
 0x130   :  { %v594_v36 = vadd.f32 %v3557_v35, %v4209_v4  ;;  %v588_v37 = vpop.f32.mrb[45].mxu0 }
 0x131   :  { %v772_v38 = vpack.c.bf16 %v730_v33, %v729_v34  ;;  %v589_v39 = vadd.f32 %v4209_v4, %v588_v37 }
 0x132   :  { %v732_v40 = vmax.f32 %v594_v36, 0.0 }
 0x133   :  { %3630 = vmatmul.mubr.msk.bf16.gmra.mrb[8].mxu1 %vm806_vm1, %v772_v38  ;;  %v731_v41 = vmax.f32 %v589_v39, 0.0  ;;  %v3560_v42 = vpop.f32.mrb[46].mxu0 }
 0x134   :  { %v604_v43 = vadd.f32 %v3560_v42, %v4209_v4  ;;  %v598_v44 = vpop.f32.mrb[47].mxu0 }
 0x135   :  { %v773_v45 = vpack.c.bf16 %v732_v40, %v731_v41  ;;  %v599_v46 = vadd.f32 %v4209_v4, %v598_v44  ;;  %v3743_v44 = vld [vmem:[%s5133_s7 + $0x4] ss:$8 sps:$4 sm:$0xff]  }
 0x136   :  { %v734_v47 = vmax.f32 %v604_v43, 0.0  ;;  %v3741_v43 = vld [vmem:[%s5133_s7] ss:$8 sps:$4 sm:$0xff]   ;;  %1917 = vmatprep.subr.bf16.mxu1 %v3743_v44 }
 0x137   :  { %v733_v48 = vmax.f32 %v599_v46, 0.0  ;;  %3633 = vmatprep.mubr.msk.bf16.mxu1 %vm806_vm1, %v773_v45  ;;  %v3563_v49 = vpop.f32.mrb[48].mxu0  ;;  %1918 = vmatpush1.bf16.msra.mxu1 %v3741_v43  ;;  %v3746_v45 = vld [vmem:[%s5133_s7 + $0x14] ss:$8 sps:$4 sm:$0xff]   ;;  %v3747_v46 = vld [vmem:[%s5133_s7 + $0x20] ss:$8 sps:$4 sm:$0xff]  }
 0x138   :  { %v614_v50 = vadd.f32 %v3563_v49, %v4209_v4  ;;  %v608_v51 = vpop.f32.mrb[49].mxu0  ;;  %1919 = vmatprep.subr.bf16.mxu1 %v3746_v45  ;;  %v3752_v49 = vld [vmem:[%s5133_s7 + $0x34] ss:$8 sps:$4 sm:$0xff]  }
 0x139   :  { %v774_v52 = vpack.c.bf16 %v734_v47, %v733_v48  ;;  %v609_v53 = vadd.f32 %v4209_v4, %v608_v51  ;;  %v3749_v47 = vld [vmem:[%s5133_s7 + $0x24] ss:$8 sps:$4 sm:$0xff]   ;;  %v3750_v48 = vld [vmem:[%s5133_s7 + $0x30] ss:$8 sps:$4 sm:$0xff]  }
 0x13a   :  { %v736_v54 = vmax.f32 %v614_v50, 0.0  ;;  %v3753_v50 = vld [vmem:[%s5133_s7 + $0x40] ss:$8 sps:$4 sm:$0xff]   ;;  %v3755_v51 = vld [vmem:[%s5133_s7 + $0x44] ss:$8 sps:$4 sm:$0xff]  }
 0x13b   :  { %3634 = vmatmul.mubr.msk.bf16.gmra.mrb[12].mxu1 %vm806_vm1, %v774_v52  ;;  %v735_v55 = vmax.f32 %v609_v53, 0.0  ;;  %v3566_v56 = vpop.f32.mrb[50].mxu0  ;;  %v3756_v52 = vld [vmem:[%s5133_s7 + $0x50] ss:$8 sps:$4 sm:$0xff]   ;;  %v3758_v53 = vld [vmem:[%s5133_s7 + $0x54] ss:$8 sps:$4 sm:$0xff]  }
 0x13c   :  { %v624_v57 = vadd.f32 %v3566_v56, %v4209_v4  ;;  %v618_v58 = vpop.f32.mrb[51].mxu0  ;;  %v3759_v56 = vld [vmem:[%s5133_s7 + $0x60] ss:$8 sps:$4 sm:$0xff]  }
 0x13d   :  { %v775_v59 = vpack.c.bf16 %v736_v54, %v735_v55  ;;  %v619_v60 = vadd.f32 %v4209_v4, %v618_v58  ;;  %v4355_v54 = vld [vmem:[%s5130_s4] ss:$0 sm:$0xff] }
 0x13e   :  { %v738_v61 = vmax.f32 %v624_v57, 0.0  ;;  %v3761_v57 = vld [vmem:[%s5133_s7 + $0x64] ss:$8 sps:$4 sm:$0xff]  }
 0x13f   :  { %v737_v62 = vmax.f32 %v619_v60, 0.0  ;;  %v3569_v63 = vpop.f32.mrb[52].mxu0  ;;  %3637 = vmatprep.mubr.msk.bf16.mxu1 %vm806_vm1, %v775_v59 }
 0x140   :  { %v634_v0 = vadd.f32 %v3569_v63, %v4209_v4  ;;  %v628_v1 = vpop.f32.mrb[53].mxu0 }
 0x141   :  { %v776_v2 = vpack.c.bf16 %v738_v61, %v737_v62  ;;  %v629_v3 = vadd.f32 %v4209_v4, %v628_v1 }
 0x142   :  { %v740_v5 = vmax.f32 %v634_v0, 0.0 }
 0x143   :  { %v739_v6 = vmax.f32 %v629_v3, 0.0  ;;  %v3572_v7 = vpop.f32.mrb[54].mxu0  ;;  %3638 = vmatmul.mubr.msk.bf16.gmra.mrb[16].mxu1 %vm806_vm1, %v776_v2 }
 0x144   :  { %v644_v8 = vadd.f32 %v3572_v7, %v4209_v4  ;;  %v638_v9 = vpop.f32.mrb[55].mxu0 }
 0x145   :  { %v777_v10 = vpack.c.bf16 %v740_v5, %v739_v6  ;;  %v639_v11 = vadd.f32 %v4209_v4, %v638_v9 }
 0x146   :  { %v742_v12 = vmax.f32 %v644_v8, 0.0 }
 0x147   :  { %v741_v13 = vmax.f32 %v639_v11, 0.0  ;;  %v3575_v14 = vpop.f32.mrb[56].mxu0  ;;  %3641 = vmatprep.mubr.msk.bf16.mxu1 %vm806_vm1, %v777_v10 }
 0x148   :  { %v654_v15 = vadd.f32 %v3575_v14, %v4209_v4  ;;  %v648_v16 = vpop.f32.mrb[57].mxu0 }
 0x149   :  { %v778_v17 = vpack.c.bf16 %v742_v12, %v741_v13  ;;  %v649_v18 = vadd.f32 %v4209_v4, %v648_v16 }
 0x14a   :  { %v744_v19 = vmax.f32 %v654_v15, 0.0 }
 0x14b   :  { %v743_v20 = vmax.f32 %v649_v18, 0.0  ;;  %v3578_v21 = vpop.f32.mrb[58].mxu0  ;;  %3642 = vmatmul.mubr.msk.bf16.gmra.mrb[20].mxu1 %vm806_vm1, %v778_v17 }
 0x14c   :  { %v664_v22 = vadd.f32 %v3578_v21, %v4209_v4  ;;  %v658_v23 = vpop.f32.mrb[59].mxu0 }
 0x14d   :  { %v779_v24 = vpack.c.bf16 %v744_v19, %v743_v20  ;;  %v659_v25 = vadd.f32 %v4209_v4, %v658_v23 }
 0x14e   :  { %v746_v26 = vmax.f32 %v664_v22, 0.0 }
 0x14f   :  { %v745_v27 = vmax.f32 %v659_v25, 0.0  ;;  %v3581_v28 = vpop.f32.mrb[60].mxu0  ;;  %3645 = vmatprep.mubr.msk.bf16.mxu1 %vm806_vm1, %v779_v24 }
 0x150   :  { %v674_v29 = vadd.f32 %v3581_v28, %v4209_v4  ;;  %v668_v30 = vpop.f32.mrb[61].mxu0 }
 0x151   :  { %v780_v31 = vpack.c.bf16 %v746_v26, %v745_v27  ;;  %v669_v32 = vadd.f32 %v4209_v4, %v668_v30 }
 0x152   :  { %v748_v33 = vmax.f32 %v674_v29, 0.0 }
 0x153   :  { %v747_v34 = vmax.f32 %v669_v32, 0.0  ;;  %v3584_v35 = vpop.f32.mrb[62].mxu0  ;;  %3646 = vmatmul.mubr.msk.bf16.gmra.mrb[24].mxu1 %vm806_vm1, %v780_v31 }
 0x154   :  { %v684_v36 = vadd.f32 %v3584_v35, %v4209_v4  ;;  %v678_v37 = vpop.f32.mrb[63].mxu0 }
 0x155   :  { %v781_v38 = vpack.c.bf16 %v748_v33, %v747_v34  ;;  %v679_v39 = vadd.f32 %v4209_v4, %v678_v37  ;;  %v3744_v4 = vld [vmem:[%s5133_s7 + $0x10] ss:$8 sps:$4 sm:$0xff]  }
 0x156   :  { %v750_v40 = vmax.f32 %v684_v36, 0.0  ;;  %1920 = vmatpush1.bf16.msra.mxu1 %v3744_v4 }
 0x157   :  { %v749_v41 = vmax.f32 %v679_v39, 0.0  ;;  %3649 = vmatprep.mubr.msk.bf16.mxu1 %vm806_vm1, %v781_v38  ;;  %1921 = vmatprep.subr.bf16.mxu1 %v3749_v47 }
 0x159   :  { %v782_v42 = vpack.c.bf16 %v750_v40, %v749_v41 }
 0x15a   :  { %1922 = vmatpush1.bf16.msra.mxu1 %v3747_v46 }
 0x15b   :  { %3650 = vmatmul.mubr.msk.bf16.gmra.mrb[28].mxu1 %vm806_vm1, %v782_v42  ;;  %1923 = vmatprep.subr.bf16.mxu1 %v3752_v49 }
 0x15e   :  { %1924 = vmatpush1.bf16.msra.mxu1 %v3750_v48 }
 0x15f   :  { %1925 = vmatprep.subr.bf16.mxu1 %v3755_v51 }
 0x162   :  { %1926 = vmatpush1.bf16.msra.mxu1 %v3753_v50 }
 0x163   :  { %1927 = vmatprep.subr.bf16.mxu1 %v3758_v53 }
 0x166   :  { %1928 = vmatpush1.bf16.msra.mxu1 %v3756_v52 }
 0x167   :  { %1929 = vmatprep.subr.bf16.mxu1 %v3761_v57 }
 0x16a   :  { %1930 = vmatpush1.bf16.msra.mxu1 %v3759_v56 }
 0x1b6   :  { %v3591_v55 = vpop.f32.mrb[64].mxu0 }
 0x1b7   :  { %v946_v58 = vadd.f32 %v3591_v55, %v4355_v54  ;;  %v937_v59 = vpop.f32.mrb[65].mxu0 }
 0x1b8   :  { %v938_v60 = vadd.f32 %v4355_v54, %v937_v59  ;;  %v3592_v61 = vpop.f32.mrb[66].mxu0 }
 0x1b9   :  { %v949_v62 = vadd.f32 %v3592_v61, %v4355_v54  ;;  %v940_v63 = vpop.f32.mrb[67].mxu0  ;;  %v1194_v1 = vmax.f32 %v946_v58, 0.0 }
 0x1ba   :  { %v941_v0 = vadd.f32 %v4355_v54, %v940_v63  ;;  %v1192_v3 = vmax.f32 %v938_v60, 0.0 }
 0x1bb   :  { %v1195_v2 = vmax.f32 %v949_v62, 0.0 }
 0x1bc   :  { %v1193_v5 = vmax.f32 %v941_v0, 0.0 }
 0x1bd   :  { %v1257_v6 = vpack.c.bf16 %v1195_v2, %v1194_v1 }
 0x1be   :  { %v1256_v7 = vpack.c.bf16 %v1193_v5, %v1192_v3  ;;  %v3595_v8 = vpop.f32.mrb[68].mxu0 }
 0x1bf   :  { %v962_v9 = vadd.f32 %v3595_v8, %v4355_v54  ;;  %v953_v10 = vpop.f32.mrb[69].mxu0 }
 0x1c0   :  { %v954_v11 = vadd.f32 %v4355_v54, %v953_v10  ;;  %v3596_v12 = vpop.f32.mrb[70].mxu0  ;;  %3661 = vmatprep.mubr.msk.bf16.mxu0 %vm1327_vm2, %v1256_v7 }
 0x1c1   :  { %v1198_v13 = vmax.f32 %v962_v9, 0.0  ;;  %v965_v14 = vadd.f32 %v3596_v12, %v4355_v54  ;;  %v956_v15 = vpop.f32.mrb[71].mxu0  ;;  %3662 = vmatmul.mubr.msk.bf16.vlgmr.msra.gmra.mrb[96].mxu0 %vm1327_vm2, %v1257_v6 }
 0x1c2   :  { %v1196_v16 = vmax.f32 %v954_v11, 0.0  ;;  %v957_v17 = vadd.f32 %v4355_v54, %v956_v15 }
 0x1c3   :  { %v1199_v18 = vmax.f32 %v965_v14, 0.0 }
 0x1c4   :  { %v1197_v19 = vmax.f32 %v957_v17, 0.0 }
 0x1c5   :  { %v1259_v20 = vpack.c.bf16 %v1199_v18, %v1198_v13 }
 0x1c6   :  { %v1258_v21 = vpack.c.bf16 %v1197_v19, %v1196_v16  ;;  %v3599_v22 = vpop.f32.mrb[72].mxu0 }
 0x1c7   :  { %v978_v23 = vadd.f32 %v3599_v22, %v4355_v54  ;;  %v969_v24 = vpop.f32.mrb[73].mxu0 }
 0x1c8   :  { %3665 = vmatprep.mubr.msk.bf16.mxu0 %vm1327_vm2, %v1258_v21  ;;  %v970_v25 = vadd.f32 %v4355_v54, %v969_v24  ;;  %v3600_v26 = vpop.f32.mrb[74].mxu0 }
 0x1c9   :  { %3666 = vmatmul.mubr.msk.bf16.gmra.mrb[100].mxu0 %vm1327_vm2, %v1259_v20  ;;  %v1202_v27 = vmax.f32 %v978_v23, 0.0  ;;  %v981_v28 = vadd.f32 %v3600_v26, %v4355_v54  ;;  %v972_v29 = vpop.f32.mrb[75].mxu0 }
 0x1ca   :  { %v1200_v30 = vmax.f32 %v970_v25, 0.0  ;;  %v973_v31 = vadd.f32 %v4355_v54, %v972_v29 }
 0x1cb   :  { %v1203_v32 = vmax.f32 %v981_v28, 0.0 }
 0x1cc   :  { %v1201_v33 = vmax.f32 %v973_v31, 0.0 }
 0x1cd   :  { %v1261_v34 = vpack.c.bf16 %v1203_v32, %v1202_v27 }
 0x1ce   :  { %v1260_v35 = vpack.c.bf16 %v1201_v33, %v1200_v30  ;;  %v3603_v36 = vpop.f32.mrb[76].mxu0 }
 0x1cf   :  { %v994_v37 = vadd.f32 %v3603_v36, %v4355_v54  ;;  %v985_v38 = vpop.f32.mrb[77].mxu0 }
 0x1d0   :  { %3669 = vmatprep.mubr.msk.bf16.mxu0 %vm1327_vm2, %v1260_v35  ;;  %v986_v39 = vadd.f32 %v4355_v54, %v985_v38  ;;  %v3604_v40 = vpop.f32.mrb[78].mxu0 }
 0x1d1   :  { %3670 = vmatmul.mubr.msk.bf16.gmra.mrb[104].mxu0 %vm1327_vm2, %v1261_v34  ;;  %v1206_v41 = vmax.f32 %v994_v37, 0.0  ;;  %v997_v42 = vadd.f32 %v3604_v40, %v4355_v54  ;;  %v988_v43 = vpop.f32.mrb[79].mxu0 }
 0x1d2   :  { %v1204_v44 = vmax.f32 %v986_v39, 0.0  ;;  %v989_v4 = vadd.f32 %v4355_v54, %v988_v43 }
 0x1d3   :  { %v1207_v45 = vmax.f32 %v997_v42, 0.0 }
 0x1d4   :  { %v1205_v46 = vmax.f32 %v989_v4, 0.0 }
 0x1d5   :  { %v1263_v47 = vpack.c.bf16 %v1207_v45, %v1206_v41 }
 0x1d6   :  { %v1262_v48 = vpack.c.bf16 %v1205_v46, %v1204_v44  ;;  %v3607_v49 = vpop.f32.mrb[80].mxu0 }
 0x1d7   :  { %v1010_v50 = vadd.f32 %v3607_v49, %v4355_v54  ;;  %v1001_v51 = vpop.f32.mrb[81].mxu0 }
 0x1d8   :  { %3673 = vmatprep.mubr.msk.bf16.mxu0 %vm1327_vm2, %v1262_v48  ;;  %v1002_v52 = vadd.f32 %v4355_v54, %v1001_v51  ;;  %v3608_v53 = vpop.f32.mrb[82].mxu0 }
 0x1d9   :  { %3674 = vmatmul.mubr.msk.bf16.gmra.mrb[108].mxu0 %vm1327_vm2, %v1263_v47  ;;  %v1210_v55 = vmax.f32 %v1010_v50, 0.0  ;;  %v1013_v56 = vadd.f32 %v3608_v53, %v4355_v54  ;;  %v1004_v57 = vpop.f32.mrb[83].mxu0 }
 0x1da   :  { %v1208_v58 = vmax.f32 %v1002_v52, 0.0  ;;  %v1005_v59 = vadd.f32 %v4355_v54, %v1004_v57 }
 0x1db   :  { %v1211_v60 = vmax.f32 %v1013_v56, 0.0 }
 0x1dc   :  { %v1209_v61 = vmax.f32 %v1005_v59, 0.0 }
 0x1dd   :  { %v1265_v62 = vpack.c.bf16 %v1211_v60, %v1210_v55 }
 0x1de   :  { %v1264_v63 = vpack.c.bf16 %v1209_v61, %v1208_v58  ;;  %v3611_v0 = vpop.f32.mrb[84].mxu0 }
 0x1df   :  { %v1026_v1 = vadd.f32 %v3611_v0, %v4355_v54  ;;  %v1017_v2 = vpop.f32.mrb[85].mxu0 }
 0x1e0   :  { %3677 = vmatprep.mubr.msk.bf16.mxu0 %vm1327_vm2, %v1264_v63  ;;  %v1018_v3 = vadd.f32 %v4355_v54, %v1017_v2  ;;  %v3612_v5 = vpop.f32.mrb[86].mxu0 }
 0x1e1   :  { %3678 = vmatmul.mubr.msk.bf16.gmra.mrb[112].mxu0 %vm1327_vm2, %v1265_v62  ;;  %v1214_v6 = vmax.f32 %v1026_v1, 0.0  ;;  %v1029_v7 = vadd.f32 %v3612_v5, %v4355_v54  ;;  %v1020_v8 = vpop.f32.mrb[87].mxu0 }
 0x1e2   :  { %v1212_v9 = vmax.f32 %v1018_v3, 0.0  ;;  %v1021_v10 = vadd.f32 %v4355_v54, %v1020_v8 }
 0x1e3   :  { %v1215_v11 = vmax.f32 %v1029_v7, 0.0 }
 0x1e4   :  { %v1213_v12 = vmax.f32 %v1021_v10, 0.0 }
 0x1e5   :  { %v1267_v13 = vpack.c.bf16 %v1215_v11, %v1214_v6 }
 0x1e6   :  { %v1266_v14 = vpack.c.bf16 %v1213_v12, %v1212_v9  ;;  %v3615_v15 = vpop.f32.mrb[88].mxu0 }
 0x1e7   :  { %v1042_v16 = vadd.f32 %v3615_v15, %v4355_v54  ;;  %v1033_v17 = vpop.f32.mrb[89].mxu0 }
 0x1e8   :  { %3681 = vmatprep.mubr.msk.bf16.mxu0 %vm1327_vm2, %v1266_v14  ;;  %v1034_v18 = vadd.f32 %v4355_v54, %v1033_v17  ;;  %v3616_v19 = vpop.f32.mrb[90].mxu0 }
 0x1e9   :  { %3682 = vmatmul.mubr.msk.bf16.gmra.mrb[116].mxu0 %vm1327_vm2, %v1267_v13  ;;  %v1218_v20 = vmax.f32 %v1042_v16, 0.0  ;;  %v1045_v21 = vadd.f32 %v3616_v19, %v4355_v54  ;;  %v1036_v22 = vpop.f32.mrb[91].mxu0 }
 0x1ea   :  { %v1216_v23 = vmax.f32 %v1034_v18, 0.0  ;;  %v1037_v24 = vadd.f32 %v4355_v54, %v1036_v22 }
 0x1eb   :  { %v1219_v25 = vmax.f32 %v1045_v21, 0.0 }
 0x1ec   :  { %v1217_v26 = vmax.f32 %v1037_v24, 0.0 }
 0x1ed   :  { %v1269_v27 = vpack.c.bf16 %v1219_v25, %v1218_v20 }
 0x1ee   :  { %v1268_v28 = vpack.c.bf16 %v1217_v26, %v1216_v23  ;;  %v3619_v29 = vpop.f32.mrb[92].mxu0 }
 0x1ef   :  { %v1058_v30 = vadd.f32 %v3619_v29, %v4355_v54  ;;  %v1049_v31 = vpop.f32.mrb[93].mxu0 }
 0x1f0   :  { %3685 = vmatprep.mubr.msk.bf16.mxu0 %vm1327_vm2, %v1268_v28  ;;  %v1050_v32 = vadd.f32 %v4355_v54, %v1049_v31  ;;  %v3620_v33 = vpop.f32.mrb[94].mxu0 }
 0x1f1   :  { %3686 = vmatmul.mubr.msk.bf16.gmra.mrb[120].mxu0 %vm1327_vm2, %v1269_v27  ;;  %v1222_v34 = vmax.f32 %v1058_v30, 0.0  ;;  %v1061_v35 = vadd.f32 %v3620_v33, %v4355_v54  ;;  %v1052_v36 = vpop.f32.mrb[95].mxu0 }
 0x1f2   :  { %v1220_v37 = vmax.f32 %v1050_v32, 0.0  ;;  %v1053_v38 = vadd.f32 %v4355_v54, %v1052_v36 }
 0x1f3   :  { %v1223_v39 = vmax.f32 %v1061_v35, 0.0 }
 0x1f4   :  { %v1221_v40 = vmax.f32 %v1053_v38, 0.0 }
 0x1f5   :  { %v1271_v41 = vpack.c.bf16 %v1223_v39, %v1222_v34 }
 0x1f6   :  { %v1270_v42 = vpack.c.bf16 %v1221_v40, %v1220_v37  ;;  %v3623_v43 = vpop.f32.mrb[0].mxu1 }
 0x1f7   :  { %v1074_v44 = vadd.f32 %v3623_v43, %v4355_v54  ;;  %v1065_v4 = vpop.f32.mrb[1].mxu1 }
 0x1f8   :  { %3689 = vmatprep.mubr.msk.bf16.mxu0 %vm1327_vm2, %v1270_v42  ;;  %v1066_v45 = vadd.f32 %v4355_v54, %v1065_v4  ;;  %v3624_v46 = vpop.f32.mrb[2].mxu1  ;;  %v3764_v42 = vld [vmem:[%s5133_s7 + $0x74] ss:$8 sps:$4 sm:$0xff]  }
 0x1f9   :  { %3690 = vmatmul.mubr.msk.bf16.gmra.mrb[124].mxu0 %vm1327_vm2, %v1271_v41  ;;  %v1226_v47 = vmax.f32 %v1074_v44, 0.0  ;;  %v1077_v48 = vadd.f32 %v3624_v46, %v4355_v54  ;;  %v1068_v49 = vpop.f32.mrb[3].mxu1  ;;  %v3762_v41 = vld [vmem:[%s5133_s7 + $0x70] ss:$8 sps:$4 sm:$0xff]   ;;  %1931 = vmatprep.subr.bf16.mxu1 %v3764_v42 }
 0x1fa   :  { %v1224_v50 = vmax.f32 %v1066_v45, 0.0  ;;  %v1069_v51 = vadd.f32 %v4355_v54, %v1068_v49  ;;  %1932 = vmatpush1.bf16.msra.mxu1 %v3762_v41 }
 0x1fb   :  { %v1227_v52 = vmax.f32 %v1077_v48, 0.0 }
 0x1fc   :  { %v1225_v53 = vmax.f32 %v1069_v51, 0.0 }
 0x1fd   :  { %v1273_v55 = vpack.c.bf16 %v1227_v52, %v1226_v47 }
 0x1fe   :  { %v1272_v56 = vpack.c.bf16 %v1225_v53, %v1224_v50  ;;  %v3627_v57 = vpop.f32.mrb[4].mxu1  ;;  %v3877_v50 = vmov 0  }
 0x1ff   :  { %v1090_v58 = vadd.f32 %v3627_v57, %v4355_v54  ;;  %v1081_v59 = vpop.f32.mrb[5].mxu1  ;;  %1949 = vmatprep.mubr.bf16.mxu1 %v3877_v50 }
 0x200   :  { %3693 = vmatprep.mubr.msk.bf16.mxu0 %vm1327_vm2, %v1272_v56  ;;  %v1082_v60 = vadd.f32 %v4355_v54, %v1081_v59  ;;  %v3628_v61 = vpop.f32.mrb[6].mxu1 }
 0x201   :  { %3694 = vmatmul.mubr.msk.bf16.gmra.mrb[128].mxu0 %vm1327_vm2, %v1273_v55  ;;  %v1230_v62 = vmax.f32 %v1090_v58, 0.0  ;;  %v1093_v63 = vadd.f32 %v3628_v61, %v4355_v54  ;;  %v1084_v0 = vpop.f32.mrb[7].mxu1 }
 0x202   :  { %v1228_v1 = vmax.f32 %v1082_v60, 0.0  ;;  %v1085_v2 = vadd.f32 %v4355_v54, %v1084_v0 }
 0x203   :  { %v1231_v3 = vmax.f32 %v1093_v63, 0.0 }
 0x204   :  { %v1229_v5 = vmax.f32 %v1085_v2, 0.0 }
 0x205   :  { %v1275_v6 = vpack.c.bf16 %v1231_v3, %v1230_v62 }
 0x206   :  { %v1274_v7 = vpack.c.bf16 %v1229_v5, %v1228_v1  ;;  %v3631_v8 = vpop.f32.mrb[8].mxu1 }
 0x207   :  { %v1106_v9 = vadd.f32 %v3631_v8, %v4355_v54  ;;  %v1097_v10 = vpop.f32.mrb[9].mxu1 }
 0x208   :  { %3697 = vmatprep.mubr.msk.bf16.mxu0 %vm1327_vm2, %v1274_v7  ;;  %v1098_v11 = vadd.f32 %v4355_v54, %v1097_v10  ;;  %v3632_v12 = vpop.f32.mrb[10].mxu1 }
 0x209   :  { %3698 = vmatmul.mubr.msk.bf16.gmra.mrb[132].mxu0 %vm1327_vm2, %v1275_v6  ;;  %v1234_v13 = vmax.f32 %v1106_v9, 0.0  ;;  %v1109_v14 = vadd.f32 %v3632_v12, %v4355_v54  ;;  %v1100_v15 = vpop.f32.mrb[11].mxu1 }
 0x20a   :  { %v1232_v16 = vmax.f32 %v1098_v11, 0.0  ;;  %v1101_v17 = vadd.f32 %v4355_v54, %v1100_v15 }
 0x20b   :  { %v1235_v18 = vmax.f32 %v1109_v14, 0.0 }
 0x20c   :  { %v1233_v19 = vmax.f32 %v1101_v17, 0.0 }
 0x20d   :  { %v1277_v20 = vpack.c.bf16 %v1235_v18, %v1234_v13 }
 0x20e   :  { %v1276_v21 = vpack.c.bf16 %v1233_v19, %v1232_v16  ;;  %v3635_v22 = vpop.f32.mrb[12].mxu1 }
 0x20f   :  { %v1122_v23 = vadd.f32 %v3635_v22, %v4355_v54  ;;  %v1113_v24 = vpop.f32.mrb[13].mxu1 }
 0x210   :  { %3701 = vmatprep.mubr.msk.bf16.mxu0 %vm1327_vm2, %v1276_v21  ;;  %v1114_v25 = vadd.f32 %v4355_v54, %v1113_v24  ;;  %v3636_v26 = vpop.f32.mrb[14].mxu1 }
 0x211   :  { %3702 = vmatmul.mubr.msk.bf16.gmra.mrb[136].mxu0 %vm1327_vm2, %v1277_v20  ;;  %v1238_v27 = vmax.f32 %v1122_v23, 0.0  ;;  %v1125_v28 = vadd.f32 %v3636_v26, %v4355_v54  ;;  %v1116_v29 = vpop.f32.mrb[15].mxu1 }
 0x212   :  { %v1236_v30 = vmax.f32 %v1114_v25, 0.0  ;;  %v1117_v31 = vadd.f32 %v4355_v54, %v1116_v29 }
 0x213   :  { %v1239_v32 = vmax.f32 %v1125_v28, 0.0 }
 0x214   :  { %v1237_v33 = vmax.f32 %v1117_v31, 0.0 }
 0x215   :  { %v1279_v34 = vpack.c.bf16 %v1239_v32, %v1238_v27  ;;  %v4469_v32 = vld [vmem:[%s5132_s6] ss:$0 sm:$0xff] }
 0x216   :  { %v1278_v35 = vpack.c.bf16 %v1237_v33, %v1236_v30  ;;  %v3639_v36 = vpop.f32.mrb[16].mxu1 }
 0x217   :  { %v1138_v37 = vadd.f32 %v3639_v36, %v4355_v54  ;;  %v1129_v38 = vpop.f32.mrb[17].mxu1 }
 0x218   :  { %3705 = vmatprep.mubr.msk.bf16.mxu0 %vm1327_vm2, %v1278_v35  ;;  %v1130_v39 = vadd.f32 %v4355_v54, %v1129_v38  ;;  %v3640_v40 = vpop.f32.mrb[18].mxu1 }
 0x219   :  { %3706 = vmatmul.mubr.msk.bf16.gmra.mrb[140].mxu0 %vm1327_vm2, %v1279_v34  ;;  %v1242_v43 = vmax.f32 %v1138_v37, 0.0  ;;  %v1141_v44 = vadd.f32 %v3640_v40, %v4355_v54  ;;  %v1132_v4 = vpop.f32.mrb[19].mxu1 }
 0x21a   :  { %v1240_v45 = vmax.f32 %v1130_v39, 0.0  ;;  %v1133_v46 = vadd.f32 %v4355_v54, %v1132_v4 }
 0x21b   :  { %v1243_v47 = vmax.f32 %v1141_v44, 0.0 }
 0x21c   :  { %v1241_v48 = vmax.f32 %v1133_v46, 0.0 }
 0x21d   :  { %v1281_v49 = vpack.c.bf16 %v1243_v47, %v1242_v43 }
 0x21e   :  { %v1280_v51 = vpack.c.bf16 %v1241_v48, %v1240_v45  ;;  %v3643_v52 = vpop.f32.mrb[20].mxu1 }
 0x21f   :  { %v1154_v53 = vadd.f32 %v3643_v52, %v4355_v54  ;;  %v1145_v55 = vpop.f32.mrb[21].mxu1 }
 0x220   :  { %v1146_v56 = vadd.f32 %v4355_v54, %v1145_v55  ;;  %v3644_v57 = vpop.f32.mrb[22].mxu1  ;;  %3709 = vmatprep.mubr.msk.bf16.mxu0 %vm1327_vm2, %v1280_v51 }
 0x221   :  { %v1246_v58 = vmax.f32 %v1154_v53, 0.0  ;;  %v1157_v59 = vadd.f32 %v3644_v57, %v4355_v54  ;;  %v1148_v60 = vpop.f32.mrb[23].mxu1  ;;  %3710 = vmatmul.mubr.msk.bf16.gmra.mrb[144].mxu0 %vm1327_vm2, %v1281_v49 }
 0x222   :  { %v1244_v61 = vmax.f32 %v1146_v56, 0.0  ;;  %v1149_v62 = vadd.f32 %v4355_v54, %v1148_v60 }
 0x223   :  { %v1247_v63 = vmax.f32 %v1157_v59, 0.0 }
 0x224   :  { %v1245_v0 = vmax.f32 %v1149_v62, 0.0 }
 0x225   :  { %v1283_v1 = vpack.c.bf16 %v1247_v63, %v1246_v58 }
 0x226   :  { %v1282_v2 = vpack.c.bf16 %v1245_v0, %v1244_v61  ;;  %v3647_v3 = vpop.f32.mrb[24].mxu1 }
 0x227   :  { %v1170_v5 = vadd.f32 %v3647_v3, %v4355_v54  ;;  %v1161_v6 = vpop.f32.mrb[25].mxu1 }
 0x228   :  { %v1162_v7 = vadd.f32 %v4355_v54, %v1161_v6  ;;  %v3648_v8 = vpop.f32.mrb[26].mxu1  ;;  %3713 = vmatprep.mubr.msk.bf16.mxu0 %vm1327_vm2, %v1282_v2 }
 0x229   :  { %v1250_v9 = vmax.f32 %v1170_v5, 0.0  ;;  %v1173_v10 = vadd.f32 %v3648_v8, %v4355_v54  ;;  %v1164_v11 = vpop.f32.mrb[27].mxu1  ;;  %3714 = vmatmul.mubr.msk.bf16.gmra.mrb[148].mxu0 %vm1327_vm2, %v1283_v1 }
 0x22a   :  { %v1248_v12 = vmax.f32 %v1162_v7, 0.0  ;;  %v1165_v13 = vadd.f32 %v4355_v54, %v1164_v11 }
 0x22b   :  { %v1251_v14 = vmax.f32 %v1173_v10, 0.0 }
 0x22c   :  { %v1249_v15 = vmax.f32 %v1165_v13, 0.0 }
 0x22d   :  { %v1285_v16 = vpack.c.bf16 %v1251_v14, %v1250_v9 }
 0x22e   :  { %v1284_v17 = vpack.c.bf16 %v1249_v15, %v1248_v12  ;;  %v3651_v18 = vpop.f32.mrb[28].mxu1 }
 0x22f   :  { %v1186_v19 = vadd.f32 %v3651_v18, %v4355_v54  ;;  %v1177_v20 = vpop.f32.mrb[29].mxu1 }
 0x230   :  { %v1178_v21 = vadd.f32 %v4355_v54, %v1177_v20  ;;  %v3652_v22 = vpop.f32.mrb[30].mxu1  ;;  %3717 = vmatprep.mubr.msk.bf16.mxu0 %vm1327_vm2, %v1284_v17 }
 0x231   :  { %v1254_v23 = vmax.f32 %v1186_v19, 0.0  ;;  %v1189_v24 = vadd.f32 %v3652_v22, %v4355_v54  ;;  %v1180_v25 = vpop.f32.mrb[31].mxu1  ;;  %3718 = vmatmul.mubr.msk.bf16.gmra.mrb[152].mxu0 %vm1327_vm2, %v1285_v16 }
 0x232   :  { %v1252_v26 = vmax.f32 %v1178_v21, 0.0  ;;  %v1181_v27 = vadd.f32 %v4355_v54, %v1180_v25 }
 0x233   :  { %v1255_v28 = vmax.f32 %v1189_v24, 0.0 }
 0x234   :  { %v1253_v29 = vmax.f32 %v1181_v27, 0.0 }
 0x235   :  { %v1287_v30 = vpack.c.bf16 %v1255_v28, %v1254_v23 }
 0x236   :  { %v1286_v31 = vpack.c.bf16 %v1253_v29, %v1252_v26 }
 0x238   :  { %3721 = vmatprep.mubr.msk.bf16.mxu0 %vm1327_vm2, %v1286_v31 }
 0x239   :  { %3722 = vmatmul.mubr.msk.bf16.gmra.mrb[156].mxu0 %vm1327_vm2, %v1287_v30 }
 0x294   :  { %v3663_v33 = vpop.f32.mrb[96].mxu0 }
 0x295   :  { %v1467_v34 = vadd.f32 %v3663_v33, %v4469_v32  ;;  %v1458_v35 = vpop.f32.mrb[97].mxu0 }
 0x296   :  { %v1459_v36 = vadd.f32 %v4469_v32, %v1458_v35  ;;  %v3664_v54 = vpop.f32.mrb[98].mxu0 }
 0x297   :  { %v1470_v37 = vadd.f32 %v3664_v54, %v4469_v32  ;;  %v1461_v38 = vpop.f32.mrb[99].mxu0  ;;  %v1715_v40 = vmax.f32 %v1467_v34, 0.0 }
 0x298   :  { %v1462_v39 = vadd.f32 %v4469_v32, %v1461_v38  ;;  %v1713_v42 = vmax.f32 %v1459_v36, 0.0 }
 0x299   :  { %v1716_v41 = vmax.f32 %v1470_v37, 0.0 }
 0x29a   :  { %v1714_v43 = vmax.f32 %v1462_v39, 0.0 }
 0x29b   :  { %v1778_v44 = vpack.c.bf16 %v1716_v41, %v1715_v40 }
 0x29c   :  { %v1777_v4 = vpack.c.bf16 %v1714_v43, %v1713_v42  ;;  %v3667_v45 = vpop.f32.mrb[100].mxu0 }
 0x29d   :  { %v1483_v46 = vadd.f32 %v3667_v45, %v4469_v32  ;;  %v1474_v47 = vpop.f32.mrb[101].mxu0 }
 0x29e   :  { %v1475_v48 = vadd.f32 %v4469_v32, %v1474_v47  ;;  %v3668_v49 = vpop.f32.mrb[102].mxu0  ;;  %1950 = vmatmul.mubr.bf16.vlgmr.msra.gmra.mrb[32].mxu1 %v1777_v4 }
 0x29f   :  { %v1719_v51 = vmax.f32 %v1483_v46, 0.0  ;;  %v1486_v52 = vadd.f32 %v3668_v49, %v4469_v32  ;;  %v1477_v53 = vpop.f32.mrb[103].mxu0  ;;  %1959 = vmatprep.mubr.bf16.mxu1 %v3877_v50 }
 0x2a0   :  { %v1717_v55 = vmax.f32 %v1475_v48, 0.0  ;;  %v1478_v56 = vadd.f32 %v4469_v32, %v1477_v53 }
 0x2a1   :  { %v1720_v57 = vmax.f32 %v1486_v52, 0.0 }
 0x2a2   :  { %v1718_v58 = vmax.f32 %v1478_v56, 0.0 }
 0x2a3   :  { %v1780_v59 = vpack.c.bf16 %v1720_v57, %v1719_v51 }
 0x2a4   :  { %v1779_v60 = vpack.c.bf16 %v1718_v58, %v1717_v55  ;;  %v3671_v61 = vpop.f32.mrb[104].mxu0 }
 0x2a5   :  { %v1499_v62 = vadd.f32 %v3671_v61, %v4469_v32  ;;  %v1490_v63 = vpop.f32.mrb[105].mxu0 }
 0x2a6   :  { %1960 = vmatmul.mubr.bf16.gmra.mrb[36].mxu1 %v1778_v44  ;;  %v1491_v0 = vadd.f32 %v4469_v32, %v1490_v63  ;;  %v3672_v1 = vpop.f32.mrb[106].mxu0 }
 0x2a7   :  { %v1723_v2 = vmax.f32 %v1499_v62, 0.0  ;;  %1969 = vmatprep.mubr.bf16.mxu1 %v3877_v50  ;;  %v1502_v3 = vadd.f32 %v3672_v1, %v4469_v32  ;;  %v1493_v5 = vpop.f32.mrb[107].mxu0 }
 0x2a8   :  { %v1721_v6 = vmax.f32 %v1491_v0, 0.0  ;;  %v1494_v7 = vadd.f32 %v4469_v32, %v1493_v5 }
 0x2a9   :  { %v1724_v8 = vmax.f32 %v1502_v3, 0.0 }
 0x2aa   :  { %v1722_v9 = vmax.f32 %v1494_v7, 0.0 }
 0x2ab   :  { %v1782_v10 = vpack.c.bf16 %v1724_v8, %v1723_v2 }
 0x2ac   :  { %v1781_v11 = vpack.c.bf16 %v1722_v9, %v1721_v6  ;;  %v3675_v12 = vpop.f32.mrb[108].mxu0 }
 0x2ad   :  { %v1515_v13 = vadd.f32 %v3675_v12, %v4469_v32  ;;  %v1506_v14 = vpop.f32.mrb[109].mxu0 }
 0x2ae   :  { %1970 = vmatmul.mubr.bf16.gmra.mrb[40].mxu1 %v1779_v60  ;;  %v1507_v15 = vadd.f32 %v4469_v32, %v1506_v14  ;;  %v3676_v16 = vpop.f32.mrb[110].mxu0 }
 0x2af   :  { %1979 = vmatprep.mubr.bf16.mxu1 %v3877_v50  ;;  %v1727_v17 = vmax.f32 %v1515_v13, 0.0  ;;  %v1518_v18 = vadd.f32 %v3676_v16, %v4469_v32  ;;  %v1509_v19 = vpop.f32.mrb[111].mxu0 }
 0x2b0   :  { %v1725_v20 = vmax.f32 %v1507_v15, 0.0  ;;  %v1510_v21 = vadd.f32 %v4469_v32, %v1509_v19 }
 0x2b1   :  { %v1728_v22 = vmax.f32 %v1518_v18, 0.0 }
 0x2b2   :  { %v1726_v23 = vmax.f32 %v1510_v21, 0.0 }
 0x2b3   :  { %v4490_v24 = vpack.c.bf16 %v1728_v22, %v1727_v17 }
 0x2b4   :  { %v1783_v25 = vpack.c.bf16 %v1726_v23, %v1725_v20  ;;  %v3679_v26 = vpop.f32.mrb[112].mxu0 }
 0x2b5   :  { %v1531_v27 = vadd.f32 %v3679_v26, %v4469_v32  ;;  %v1522_v28 = vpop.f32.mrb[113].mxu0 }
 0x2b6   :  { %1980 = vmatmul.mubr.bf16.gmra.mrb[44].mxu1 %v1780_v59  ;;  %v1523_v29 = vadd.f32 %v4469_v32, %v1522_v28  ;;  %v3680_v30 = vpop.f32.mrb[114].mxu0 }
 0x2b7   :  { %1989 = vmatprep.mubr.bf16.mxu1 %v3877_v50  ;;  %v1731_v31 = vmax.f32 %v1531_v27, 0.0  ;;  %v1534_v33 = vadd.f32 %v3680_v30, %v4469_v32  ;;  %v1525_v34 = vpop.f32.mrb[115].mxu0 }
 0x2b8   :  { %v1729_v35 = vmax.f32 %v1523_v29, 0.0  ;;  %v1526_v36 = vadd.f32 %v4469_v32, %v1525_v34 }
 0x2b9   :  { %v1732_v54 = vmax.f32 %v1534_v33, 0.0 }
 0x2ba   :  { %v1730_v37 = vmax.f32 %v1526_v36, 0.0 }
 0x2bb   :  { %v4497_v38 = vpack.c.bf16 %v1732_v54, %v1731_v31 }
 0x2bc   :  { %v4499_v39 = vpack.c.bf16 %v1730_v37, %v1729_v35  ;;  %v3683_v40 = vpop.f32.mrb[116].mxu0 }
 0x2bd   :  { %v1547_v41 = vadd.f32 %v3683_v40, %v4469_v32  ;;  %v1538_v42 = vpop.f32.mrb[117].mxu0 }
 0x2be   :  { %1990 = vmatmul.mubr.bf16.gmra.mrb[48].mxu1 %v1781_v11  ;;  %v1539_v43 = vadd.f32 %v4469_v32, %v1538_v42  ;;  %v3684_v44 = vpop.f32.mrb[118].mxu0 }
 0x2bf   :  { %1999 = vmatprep.mubr.bf16.mxu1 %v3877_v50  ;;  %v1735_v4 = vmax.f32 %v1547_v41, 0.0  ;;  %v1550_v45 = vadd.f32 %v3684_v44, %v4469_v32  ;;  %v1541_v46 = vpop.f32.mrb[119].mxu0 }
 0x2c0   :  { %v1733_v47 = vmax.f32 %v1539_v43, 0.0  ;;  %v1542_v48 = vadd.f32 %v4469_v32, %v1541_v46 }
 0x2c1   :  { %v1736_v49 = vmax.f32 %v1550_v45, 0.0 }
 0x2c2   :  { %v1734_v51 = vmax.f32 %v1542_v48, 0.0 }
 0x2c3   :  { %v4506_v52 = vpack.c.bf16 %v1736_v49, %v1735_v4 }
 0x2c4   :  { %v4508_v53 = vpack.c.bf16 %v1734_v51, %v1733_v47  ;;  %v3687_v55 = vpop.f32.mrb[120].mxu0 }
 0x2c5   :  { %v1563_v56 = vadd.f32 %v3687_v55, %v4469_v32  ;;  %v1554_v57 = vpop.f32.mrb[121].mxu0 }
 0x2c6   :  { %2000 = vmatmul.mubr.bf16.gmra.mrb[52].mxu1 %v1782_v10  ;;  %v1555_v58 = vadd.f32 %v4469_v32, %v1554_v57  ;;  %v3688_v59 = vpop.f32.mrb[122].mxu0 }
 0x2c7   :  { %2009 = vmatprep.mubr.bf16.mxu1 %v3877_v50  ;;  %v1739_v60 = vmax.f32 %v1563_v56, 0.0  ;;  %v1566_v61 = vadd.f32 %v3688_v59, %v4469_v32  ;;  %v1557_v62 = vpop.f32.mrb[123].mxu0 }
 0x2c8   :  { %v1737_v63 = vmax.f32 %v1555_v58, 0.0  ;;  %v1558_v0 = vadd.f32 %v4469_v32, %v1557_v62 }
 0x2c9   :  { %v1740_v1 = vmax.f32 %v1566_v61, 0.0 }
 0x2ca   :  { %v1738_v2 = vmax.f32 %v1558_v0, 0.0 }
 0x2cb   :  { %v4515_v3 = vpack.c.bf16 %v1740_v1, %v1739_v60 }
 0x2cc   :  { %v4517_v5 = vpack.c.bf16 %v1738_v2, %v1737_v63  ;;  %v3691_v6 = vpop.f32.mrb[124].mxu0 }
 0x2cd   :  { %v1579_v7 = vadd.f32 %v3691_v6, %v4469_v32  ;;  %v1570_v8 = vpop.f32.mrb[125].mxu0 }
 0x2ce   :  { %2010 = vmatmul.mubr.bf16.gmra.mrb[56].mxu1 %v1783_v25  ;;  %v1571_v9 = vadd.f32 %v4469_v32, %v1570_v8  ;;  %v3692_v10 = vpop.f32.mrb[126].mxu0 }
 0x2cf   :  { %2019 = vmatprep.mubr.bf16.mxu1 %v3877_v50  ;;  %v1743_v11 = vmax.f32 %v1579_v7, 0.0  ;;  %v1582_v12 = vadd.f32 %v3692_v10, %v4469_v32  ;;  %v1573_v13 = vpop.f32.mrb[127].mxu0 }
 0x2d0   :  { %v1741_v14 = vmax.f32 %v1571_v9, 0.0  ;;  %v1574_v15 = vadd.f32 %v4469_v32, %v1573_v13 }
 0x2d1   :  { %v1744_v16 = vmax.f32 %v1582_v12, 0.0 }
 0x2d2   :  { %v1742_v17 = vmax.f32 %v1574_v15, 0.0 }
 0x2d3   :  { %v4524_v18 = vpack.c.bf16 %v1744_v16, %v1743_v11 }
 0x2d4   :  { %v4526_v19 = vpack.c.bf16 %v1742_v17, %v1741_v14  ;;  %v3695_v20 = vpop.f32.mrb[128].mxu0 }
 0x2d5   :  { %v1595_v21 = vadd.f32 %v3695_v20, %v4469_v32  ;;  %v1586_v22 = vpop.f32.mrb[129].mxu0 }
 0x2d6   :  { %2020 = vmatmul.mubr.bf16.gmra.mrb[60].mxu1 %v4490_v24  ;;  %v1587_v23 = vadd.f32 %v4469_v32, %v1586_v22  ;;  %v3696_v25 = vpop.f32.mrb[130].mxu0 }
 0x2d7   :  { %2029 = vmatprep.mubr.bf16.mxu1 %v3877_v50  ;;  %v1747_v26 = vmax.f32 %v1595_v21, 0.0  ;;  %v1598_v27 = vadd.f32 %v3696_v25, %v4469_v32  ;;  %v1589_v28 = vpop.f32.mrb[131].mxu0 }
 0x2d8   :  { %v1745_v29 = vmax.f32 %v1587_v23, 0.0  ;;  %v1590_v30 = vadd.f32 %v4469_v32, %v1589_v28 }
 0x2d9   :  { %v1748_v31 = vmax.f32 %v1598_v27, 0.0 }
 0x2da   :  { %v1746_v33 = vmax.f32 %v1590_v30, 0.0 }
 0x2db   :  { %v4534_v34 = vpack.c.bf16 %v1748_v31, %v1747_v26 }
 0x2dc   :  { %v4536_v35 = vpack.c.bf16 %v1746_v33, %v1745_v29  ;;  %v3699_v36 = vpop.f32.mrb[132].mxu0 }
 0x2dd   :  { %v1611_v24 = vadd.f32 %v3699_v36, %v4469_v32  ;;  %v1602_v54 = vpop.f32.mrb[133].mxu0 }
 0x2de   :  { %2030 = vmatmul.mubr.bf16.gmra.mrb[64].mxu1 %v4499_v39  ;;  %v1603_v37 = vadd.f32 %v4469_v32, %v1602_v54  ;;  %v3700_v40 = vpop.f32.mrb[134].mxu0 }
 0x2df   :  { %2039 = vmatprep.mubr.bf16.mxu1 %v3877_v50  ;;  %v1751_v41 = vmax.f32 %v1611_v24, 0.0  ;;  %v1614_v42 = vadd.f32 %v3700_v40, %v4469_v32  ;;  %v1605_v43 = vpop.f32.mrb[135].mxu0 }
 0x2e0   :  { %v1749_v44 = vmax.f32 %v1603_v37, 0.0  ;;  %v1606_v4 = vadd.f32 %v4469_v32, %v1605_v43 }
 0x2e1   :  { %v1752_v45 = vmax.f32 %v1614_v42, 0.0 }
 0x2e2   :  { %v1750_v46 = vmax.f32 %v1606_v4, 0.0 }
 0x2e3   :  { %v4544_v47 = vpack.c.bf16 %v1752_v45, %v1751_v41 }
 0x2e4   :  { %v4546_v48 = vpack.c.bf16 %v1750_v46, %v1749_v44  ;;  %v3703_v49 = vpop.f32.mrb[136].mxu0  ;;  %v3765_v46 = vld [vmem:[%s5126_s0 + $0x10] sm:$0xff] }
 0x2e5   :  { %v1627_v39 = vadd.f32 %v3703_v49, %v4469_v32  ;;  %v1618_v51 = vpop.f32.mrb[137].mxu0  ;;  %2722 = vrot.lane.b32.xlu1 %v3765_v46, %s3878_s13  ;;  %v3789_v46 = vld [vmem:[%s5126_s0 + $0xc8] sm:$0xff] }
 0x2e6   :  { %2040 = vmatmul.mubr.bf16.gmra.mrb[68].mxu1 %v4497_v38  ;;  %v1619_v55 = vadd.f32 %v4469_v32, %v1618_v51  ;;  %v3704_v56 = vpop.f32.mrb[138].mxu0 }
 0x2e7   :  { %2049 = vmatprep.mubr.bf16.mxu1 %v3877_v50  ;;  %v1755_v57 = vmax.f32 %v1627_v39, 0.0  ;;  %v1630_v58 = vadd.f32 %v3704_v56, %v4469_v32  ;;  %v1621_v59 = vpop.f32.mrb[139].mxu0 }
 0x2e8   :  { %v1753_v60 = vmax.f32 %v1619_v55, 0.0  ;;  %v1622_v61 = vadd.f32 %v4469_v32, %v1621_v59  ;;  %v3768_v59 = vld [vmem:[%s5126_s0 + $0x8] sm:$0xff] }
 0x2e9   :  { %v1756_v62 = vmax.f32 %v1630_v58, 0.0  ;;  %v3767_v58 = vld [vmem:[%s5126_s0 + $0x18] sm:$0xff] }
 0x2ea   :  { %v1754_v63 = vmax.f32 %v1622_v61, 0.0  ;;  %2724 = vrot.lane.b32.xlu1 %v3767_v58, %s3878_s13  ;;  %v3797_v58 = vld [vmem:[%s5126_s0 + $0x108] sm:$0xff] }
 0x2eb   :  { %v4554_v0 = vpack.c.bf16 %v1756_v62, %v1755_v57 }
 0x2ec   :  { %v4556_v1 = vpack.c.bf16 %v1754_v63, %v1753_v60  ;;  %v3707_v2 = vpop.f32.mrb[140].mxu0 }
 0x2ed   :  { %v1643_v38 = vadd.f32 %v3707_v2, %v4469_v32  ;;  %v1634_v6 = vpop.f32.mrb[141].mxu0 }
 0x2ee   :  { %2050 = vmatmul.mubr.bf16.gmra.mrb[72].mxu1 %v4508_v53  ;;  %v1635_v7 = vadd.f32 %v4469_v32, %v1634_v6  ;;  %v3708_v8 = vpop.f32.mrb[142].mxu0 }
 0x2ef   :  { %2059 = vmatprep.mubr.bf16.mxu1 %v3877_v50  ;;  %v1759_v9 = vmax.f32 %v1643_v38, 0.0  ;;  %v1646_v10 = vadd.f32 %v3708_v8, %v4469_v32  ;;  %v1637_v11 = vpop.f32.mrb[143].mxu0  ;;  %v3769_v8 = vld [vmem:[%s5126_s0 + $0x28] sm:$0xff] }
 0x2f0   :  { %v1757_v12 = vmax.f32 %v1635_v7, 0.0  ;;  %v1638_v13 = vadd.f32 %v4469_v32, %v1637_v11  ;;  %2728 = vrot.lane.b32.xlu1 %v3769_v8, %s3878_s13  ;;  %v3810_v8 = vld [vmem:[%s5126_s0 + $0x160] sm:$0xff] }
 0x2f1   :  { %v1760_v14 = vmax.f32 %v1646_v10, 0.0 }
 0x2f2   :  { %v1758_v15 = vmax.f32 %v1638_v13, 0.0 }
 0x2f3   :  { %v4564_v16 = vpack.c.bf16 %v1760_v14, %v1759_v9 }
 0x2f4   :  { %v4566_v17 = vpack.c.bf16 %v1758_v15, %v1757_v12  ;;  %v3711_v20 = vpop.f32.mrb[144].mxu0  ;;  %v3771_v15 = vld [vmem:[%s5126_s0 + $0x38] sm:$0xff] }
 0x2f5   :  { %v1659_v53 = vadd.f32 %v3711_v20, %v4469_v32  ;;  %v1650_v21 = vpop.f32.mrb[145].mxu0  ;;  %2732 = vrot.lane.b32.xlu1 %v3771_v15, %s3878_s13  ;;  %v3772_v20 = vld [vmem:[%s5126_s0 + $0x30] sm:$0xff] }
 0x2f6   :  { %2060 = vmatmul.mubr.bf16.gmra.mrb[76].mxu1 %v4506_v52  ;;  %v1651_v22 = vadd.f32 %v4469_v32, %v1650_v21  ;;  %v3712_v23 = vpop.f32.mrb[146].mxu0 }
 0x2f7   :  { %2069 = vmatprep.mubr.bf16.mxu1 %v3877_v50  ;;  %v1763_v25 = vmax.f32 %v1659_v53, 0.0  ;;  %v1662_v26 = vadd.f32 %v3712_v23, %v4469_v32  ;;  %v1653_v27 = vpop.f32.mrb[147].mxu0 }
 0x2f8   :  { %v1761_v28 = vmax.f32 %v1651_v22, 0.0  ;;  %v1654_v29 = vadd.f32 %v4469_v32, %v1653_v27 }
 0x2f9   :  { %v1764_v30 = vmax.f32 %v1662_v26, 0.0 }
 0x2fa   :  { %v1762_v31 = vmax.f32 %v1654_v29, 0.0  ;;  %v3773_v29 = vld [vmem:[%s5126_s0 + $0x48] sm:$0xff] }
 0x2fb   :  { %v4574_v33 = vpack.c.bf16 %v1764_v30, %v1763_v25  ;;  %2736 = vrot.lane.b32.xlu1 %v3773_v29, %s3878_s13  ;;  %v3821_v29 = vld [vmem:[%s5126_s0 + $0x1c8] sm:$0xff] }
 0x2fc   :  { %v4576_v36 = vpack.c.bf16 %v1762_v31, %v1761_v28  ;;  %v3715_v24 = vpop.f32.mrb[148].mxu0 }
 0x2fd   :  { %v1675_v52 = vadd.f32 %v3715_v24, %v4469_v32  ;;  %v1666_v54 = vpop.f32.mrb[149].mxu0 }
 0x2fe   :  { %2070 = vmatmul.mubr.bf16.gmra.mrb[80].mxu1 %v4517_v5  ;;  %v1667_v37 = vadd.f32 %v4469_v32, %v1666_v54  ;;  %v3716_v40 = vpop.f32.mrb[150].mxu0  ;;  %v3766_v5 = vld [vmem:[%s5126_s0] sm:$0xff]  ;;  %v3777_v54 = vld [vmem:[%s5126_s0 + $0x68] sm:$0xff] }
 0x2ff   :  { %2079 = vmatprep.mubr.bf16.mxu1 %v3877_v50  ;;  %v1767_v41 = vmax.f32 %v1675_v52, 0.0  ;;  %v1678_v42 = vadd.f32 %v3716_v40, %v4469_v32  ;;  %v1669_v43 = vpop.f32.mrb[151].mxu0  ;;  %2718 = vrot.lane.b32.xlu0 %v3766_v5, %s3878_s13  ;;  %v3776_v52 = vld [vmem:[%s5126_s0 + $0x50] sm:$0xff]  ;;  %v3779_v40 = vld [vmem:[%s5126_s0 + $0x78] sm:$0xff]  ;;  %v3790_v5 = vld [vmem:[%s5126_s0 + $0xc0] sm:$0xff] }
 0x300   :  { %v1765_v44 = vmax.f32 %v1667_v37, 0.0  ;;  %v1670_v4 = vadd.f32 %v4469_v32, %v1669_v43  ;;  %v3778_v37 = vld [vmem:[%s5126_s0 + $0x60] sm:$0xff]  ;;  %v3783_v43 = vld [vmem:[%s5126_s0 + $0x98] sm:$0xff] }
 0x301   :  { %v1768_v45 = vmax.f32 %v1678_v42, 0.0  ;;  %v3782_v42 = vld [vmem:[%s5126_s0 + $0x80] sm:$0xff] }
 0x302   :  { %v1766_v49 = vmax.f32 %v1670_v4, 0.0  ;;  %v3786_v4 = vld [vmem:[%s5126_s0 + $0xa0] sm:$0xff] }
 0x303   :  { %v4592_v39 = vpack.c.bf16 %v1768_v45, %v1767_v41  ;;  %2720 = vrot.lane.b32.xlu0 %v3768_v59, %s3878_s13  ;;  %v3781_v41 = vld [vmem:[%s5126_s0 + $0x88] sm:$0xff]  ;;  %v3787_v45 = vld [vmem:[%s5126_s0 + $0xb8] sm:$0xff]  ;;  %v3798_v59 = vld [vmem:[%s5126_s0 + $0x100] sm:$0xff] }
 0x304   :  { %v4594_v51 = vpack.c.bf16 %v1766_v49, %v1765_v44  ;;  %v3719_v55 = vpop.f32.mrb[152].mxu0  ;;  %v3785_v44 = vld [vmem:[%s5126_s0 + $0xa8] sm:$0xff]  ;;  %v3791_v49 = vld [vmem:[%s5126_s0 + $0xd8] sm:$0xff] }
 0x305   :  { %v1691_v56 = vadd.f32 %v3719_v55, %v4469_v32  ;;  %v1682_v57 = vpop.f32.mrb[153].mxu0  ;;  %v3793_v55 = vld [vmem:[%s5126_s0 + $0xe8] sm:$0xff] }
 0x306   :  { %2080 = vmatmul.mubr.bf16.gmra.mrb[84].mxu1 %v4515_v3  ;;  %v1683_v60 = vadd.f32 %v4469_v32, %v1682_v57  ;;  %v3720_v61 = vpop.f32.mrb[154].mxu0  ;;  %v3770_v3 = vld [vmem:[%s5126_s0 + $0x20] sm:$0xff]  ;;  %v3795_v57 = vld [vmem:[%s5126_s0 + $0xf8] sm:$0xff] }
 0x307   :  { %2089 = vmatprep.mubr.bf16.mxu1 %v3877_v50  ;;  %v1771_v62 = vmax.f32 %v1691_v56, 0.0  ;;  %v1694_v63 = vadd.f32 %v3720_v61, %v4469_v32  ;;  %v1685_v2 = vpop.f32.mrb[155].mxu0  ;;  %2726 = vrot.lane.b32.xlu0 %v3770_v3, %s3878_s13  ;;  %v3794_v56 = vld [vmem:[%s5126_s0 + $0xe0] sm:$0xff]  ;;  %v3801_v61 = vld [vmem:[%s5126_s0 + $0x128] sm:$0xff]  ;;  %v3811_v3 = vld [vmem:[%s5126_s0 + $0x178] sm:$0xff] }
 0x308   :  { %v1769_v38 = vmax.f32 %v1683_v60, 0.0  ;;  %v1686_v6 = vadd.f32 %v4469_v32, %v1685_v2  ;;  %v3799_v60 = vld [vmem:[%s5126_s0 + $0x118] sm:$0xff]  ;;  %v3805_v2 = vld [vmem:[%s5126_s0 + $0x148] sm:$0xff] }
 0x309   :  { %v1772_v7 = vmax.f32 %v1694_v63, 0.0  ;;  %v3803_v63 = vld [vmem:[%s5126_s0 + $0x138] sm:$0xff] }
 0x30a   :  { %v1770_v9 = vmax.f32 %v1686_v6, 0.0  ;;  %v3807_v6 = vld [vmem:[%s5126_s0 + $0x158] sm:$0xff] }
 0x30b   :  { %v4618_v10 = vpack.c.bf16 %v1772_v7, %v1771_v62  ;;  %2730 = vrot.lane.b32.xlu0 %v3772_v20, %s3878_s13  ;;  %v3802_v62 = vld [vmem:[%s5126_s0 + $0x120] sm:$0xff]  ;;  %v3809_v7 = vld [vmem:[%s5126_s0 + $0x168] sm:$0xff] }
 0x30c   :  { %v4620_v11 = vpack.c.bf16 %v1770_v9, %v1769_v38  ;;  %v3723_v12 = vpop.f32.mrb[156].mxu0  ;;  %v3806_v38 = vld [vmem:[%s5126_s0 + $0x140] sm:$0xff]  ;;  %v3813_v9 = vld [vmem:[%s5126_s0 + $0x188] sm:$0xff] }
 0x30d   :  { %v1707_v13 = vadd.f32 %v3723_v12, %v4469_v32  ;;  %v1698_v14 = vpop.f32.mrb[157].mxu0  ;;  %v3814_v12 = vld [vmem:[%s5126_s0 + $0x180] sm:$0xff]  ;;  %v3817_v20 = vld [vmem:[%s5126_s0 + $0x1a8] sm:$0xff] }
 0x30e   :  { %2090 = vmatmul.mubr.bf16.gmra.mrb[88].mxu1 %v4526_v19  ;;  %v1699_v53 = vadd.f32 %v4469_v32, %v1698_v14  ;;  %v3724_v21 = vpop.f32.mrb[158].mxu0  ;;  %v3774_v19 = vld [vmem:[%s5126_s0 + $0x40] sm:$0xff]  ;;  %v3815_v14 = vld [vmem:[%s5126_s0 + $0x198] sm:$0xff] }
 0x30f   :  { %2099 = vmatprep.mubr.bf16.mxu1 %v3877_v50  ;;  %v1775_v22 = vmax.f32 %v1707_v13, 0.0  ;;  %v1710_v23 = vadd.f32 %v3724_v21, %v4469_v32  ;;  %v1701_v25 = vpop.f32.mrb[159].mxu0  ;;  %2734 = vrot.lane.b32.xlu0 %v3774_v19, %s3878_s13  ;;  %v1827_v13 = vlaneseq  ;;  %v3822_v19 = vld [vmem:[%s5126_s0 + $0x1c0] sm:$0xff] }
 0x310   :  { %v1773_v26 = vmax.f32 %v1699_v53, 0.0  ;;  %v1702_v27 = vadd.f32 %v4469_v32, %v1701_v25  ;;  %v3775_v32 = vld [vmem:[%s5126_s0 + $0x58] sm:$0xff]  ;;  %v3818_v53 = vld [vmem:[%s5126_s0 + $0x1a0] sm:$0xff]  ;;  %v3820_v25 = vld [vmem:[%s5126_s0 + $0x1b0] sm:$0xff] }
 0x311   :  { %v1776_v28 = vmax.f32 %v1710_v23, 0.0  ;;  %2740 = vrot.lane.b32.xlu1 %v3775_v32, %s3878_s13  ;;  %v1828_v15 = vshrl.u32 %v1827_v13, 7  ;;  %v3819_v23 = vld [vmem:[%s5126_s0 + $0x1b8] sm:$0xff] }
 0x312   :  { %v1774_v30 = vmax.f32 %v1702_v27, 0.0 }
 0x313   :  { %v4644_v31 = vpack.c.bf16 %v1776_v28, %v1775_v22  ;;  %2738 = vrot.lane.b32.xlu0 %v3776_v52, %s3878_s13  ;;  %v1829_v21 = vsub.s32 0, %v1828_v15  ;;  %v1833_v22 = vsub.s32 1, %v1828_v15 }
 0x314   :  { %v4646_v24 = vpack.c.bf16 %v1774_v30, %v1773_v26 }
 0x315   :  { %2744 = vrot.lane.b32.xlu1 %v3777_v54, %s3878_s13 }
 0x316   :  { %2100 = vmatmul.mubr.bf16.gmra.mrb[92].mxu1 %v4524_v18  ;;  %v3780_v18 = vld [vmem:[%s5126_s0 + $0x70] sm:$0xff] }
 0x317   :  { %2109 = vmatprep.mubr.bf16.mxu1 %v3877_v50  ;;  %2742 = vrot.lane.b32.xlu0 %v3778_v37, %s3878_s13 }
 0x319   :  { %2748 = vrot.lane.b32.xlu1 %v3779_v40, %s3878_s13 }
 0x31b   :  { %2746 = vrot.lane.b32.xlu0 %v3780_v18, %s3878_s13 }
 0x31d   :  { %2752 = vrot.lane.b32.xlu1 %v3781_v41, %s3878_s13 }
 0x31e   :  { %2110 = vmatmul.mubr.bf16.gmra.mrb[96].mxu1 %v4536_v35  ;;  %v3784_v35 = vld [vmem:[%s5126_s0 + $0x90] sm:$0xff] }
 0x31f   :  { %2119 = vmatprep.mubr.bf16.mxu1 %v3877_v50  ;;  %2750 = vrot.lane.b32.xlu0 %v3782_v42, %s3878_s13 }
 0x321   :  { %2756 = vrot.lane.b32.xlu1 %v3783_v43, %s3878_s13 }
 0x323   :  { %2754 = vrot.lane.b32.xlu0 %v3784_v35, %s3878_s13 }
 0x325   :  { %2760 = vrot.lane.b32.xlu1 %v3785_v44, %s3878_s13  ;;  %v3823_v44 = vld [vmem:[%s5126_s0 + $0x1d8] sm:$0xff] }
 0x326   :  { %2120 = vmatmul.mubr.bf16.gmra.mrb[100].mxu1 %v4534_v34  ;;  %v3788_v34 = vld [vmem:[%s5126_s0 + $0xb0] sm:$0xff] }
 0x327   :  { %2129 = vmatprep.mubr.bf16.mxu1 %v3877_v50  ;;  %2758 = vrot.lane.b32.xlu0 %v3786_v4, %s3878_s13  ;;  %v3824_v4 = vld [vmem:[%s5126_s0 + $0x1d0] sm:$0xff] }
 0x329   :  { %2764 = vrot.lane.b32.xlu1 %v3787_v45, %s3878_s13 }
 0x32b   :  { %2762 = vrot.lane.b32.xlu0 %v3788_v34, %s3878_s13 }
 0x32d   :  { %2768 = vrot.lane.b32.xlu1 %v3789_v46, %s3878_s13 }
 0x32e   :  { %2130 = vmatmul.mubr.bf16.gmra.mrb[104].mxu1 %v4546_v48  ;;  %v3792_v48 = vld [vmem:[%s5126_s0 + $0xd0] sm:$0xff] }
 0x32f   :  { %2139 = vmatprep.mubr.bf16.mxu1 %v3877_v50  ;;  %2766 = vrot.lane.b32.xlu0 %v3790_v5, %s3878_s13 }
 0x331   :  { %2772 = vrot.lane.b32.xlu1 %v3791_v49, %s3878_s13 }
 0x333   :  { %2770 = vrot.lane.b32.xlu0 %v3792_v48, %s3878_s13 }
 0x335   :  { %2776 = vrot.lane.b32.xlu1 %v3793_v55, %s3878_s13  ;;  %v3825_v55 = vld [vmem:[%s5126_s0 + $0x1e8] sm:$0xff] }
 0x336   :  { %2140 = vmatmul.mubr.bf16.gmra.mrb[108].mxu1 %v4544_v47  ;;  %v3796_v47 = vld [vmem:[%s5126_s0 + $0xf0] sm:$0xff] }
 0x337   :  { %2149 = vmatprep.mubr.bf16.mxu1 %v3877_v50  ;;  %2774 = vrot.lane.b32.xlu0 %v3794_v56, %s3878_s13 }
 0x339   :  { %2780 = vrot.lane.b32.xlu1 %v3795_v57, %s3878_s13 }
 0x33b   :  { %2778 = vrot.lane.b32.xlu0 %v3796_v47, %s3878_s13 }
 0x33d   :  { %2784 = vrot.lane.b32.xlu1 %v3797_v58, %s3878_s13 }
 0x33e   :  { %2150 = vmatmul.mubr.bf16.gmra.mrb[112].mxu1 %v4556_v1  ;;  %v3800_v1 = vld [vmem:[%s5126_s0 + $0x110] sm:$0xff] }
 0x33f   :  { %2159 = vmatprep.mubr.bf16.mxu1 %v3877_v50  ;;  %2782 = vrot.lane.b32.xlu0 %v3798_v59, %s3878_s13 }
 0x341   :  { %2788 = vrot.lane.b32.xlu1 %v3799_v60, %s3878_s13 }
 0x343   :  { %2786 = vrot.lane.b32.xlu0 %v3800_v1, %s3878_s13 }
 0x345   :  { %2792 = vrot.lane.b32.xlu1 %v3801_v61, %s3878_s13 }
 0x346   :  { %2160 = vmatmul.mubr.bf16.gmra.mrb[116].mxu1 %v4554_v0  ;;  %v3804_v0 = vld [vmem:[%s5126_s0 + $0x130] sm:$0xff] }
 0x347   :  { %2169 = vmatprep.mubr.bf16.mxu1 %v3877_v50  ;;  %2790 = vrot.lane.b32.xlu0 %v3802_v62, %s3878_s13 }
 0x349   :  { %2796 = vrot.lane.b32.xlu1 %v3803_v63, %s3878_s13 }
 0x34b   :  { %2794 = vrot.lane.b32.xlu0 %v3804_v0, %s3878_s13 }
 0x34d   :  { %2800 = vrot.lane.b32.xlu1 %v3805_v2, %s3878_s13 }
 0x34e   :  { %2170 = vmatmul.mubr.bf16.gmra.mrb[120].mxu1 %v4566_v17  ;;  %v3808_v17 = vld [vmem:[%s5126_s0 + $0x150] sm:$0xff] }
 0x34f   :  { %2179 = vmatprep.mubr.bf16.mxu1 %v3877_v50  ;;  %2798 = vrot.lane.b32.xlu0 %v3806_v38, %s3878_s13  ;;  %v3827_v38 = vld [vmem:[%s5126_s0 + $0x1f8] sm:$0xff] }
 0x351   :  { %2804 = vrot.lane.b32.xlu1 %v3807_v6, %s3878_s13  ;;  %v3828_v6 = vld [vmem:[%s5126_s0 + $0x1f0] sm:$0xff] }
 0x353   :  { %2802 = vrot.lane.b32.xlu0 %v3808_v17, %s3878_s13 }
 0x355   :  { %2808 = vrot.lane.b32.xlu1 %v3809_v7, %s3878_s13 }
 0x356   :  { %2180 = vmatmul.mubr.bf16.gmra.mrb[124].mxu1 %v4564_v16  ;;  %v3812_v16 = vld [vmem:[%s5126_s0 + $0x170] sm:$0xff] }
 0x357   :  { %2189 = vmatprep.mubr.bf16.mxu1 %v3877_v50  ;;  %2806 = vrot.lane.b32.xlu0 %v3810_v8, %s3878_s13  ;;  %v2723_v54 = vpop.permute.xlu1 %2722 }
 0x358   :  { %v2913_v18 = vsel %vm2910_vm3, %v2723_v54, 0.0 }
 0x359   :  { %2812 = vrot.lane.b32.xlu1 %v3811_v3, %s3878_s13  ;;  %2977 = vst [vmem:[#allocation4 + $0x10] sm:$0xff] %v2913_v18 }
 0x35b   :  { %2810 = vrot.lane.b32.xlu0 %v3812_v16, %s3878_s13 }
 0x35c   :  { %v2725_v34 = vpop.permute.xlu1 %2724 }
 0x35d   :  { %2816 = vrot.lane.b32.xlu1 %v3813_v9, %s3878_s13  ;;  %v2914_v46 = vsel %vm2910_vm3, %v2725_v34, 0.0 }
 0x35e   :  { %2190 = vmatmul.mubr.bf16.gmra.mrb[128].mxu1 %v4576_v36  ;;  %v3816_v36 = vld [vmem:[%s5126_s0 + $0x190] sm:$0xff]  ;;  %2978 = vst [vmem:[#allocation4 + $0x18] sm:$0xff] %v2914_v46 }
 0x35f   :  { %2199 = vmatprep.mubr.bf16.mxu1 %v3877_v50  ;;  %2814 = vrot.lane.b32.xlu0 %v3814_v12, %s3878_s13 }
 0x361   :  { %2820 = vrot.lane.b32.xlu1 %v3815_v14, %s3878_s13 }
 0x362   :  { %v2729_v59 = vpop.permute.xlu1 %2728 }
 0x363   :  { %2818 = vrot.lane.b32.xlu0 %v3816_v36, %s3878_s13  ;;  %v2916_v61 = vsel %vm2910_vm3, %v2729_v59, 0.0 }
 0x364   :  { %2980 = vst [vmem:[#allocation4 + $0x28] sm:$0xff] %v2916_v61 }
 0x365   :  { %2824 = vrot.lane.b32.xlu1 %v3817_v20, %s3878_s13 }
 0x366   :  { %2200 = vmatmul.mubr.bf16.gmra.mrb[132].mxu1 %v4574_v33  ;;  %v1825_v33 = vld [vmem:[%s5134_s8] sm:$0x3] }
 0x367   :  { %2209 = vmatprep.mubr.bf16.mxu1 %v3877_v50  ;;  %2822 = vrot.lane.b32.xlu0 %v3818_v53, %s3878_s13  ;;  %v4858_v26 = vrot.slane %v1825_v33, %v1829_v21  ;;  %v4860_v27 = vrot.slane %v1825_v33, %v1833_v22  ;;  %v2733_v7 = vpop.permute.xlu1 %2732 }
 0x368   :  { %v2918_v8 = vsel %vm2910_vm3, %v2733_v7, 0.0 }
 0x369   :  { %2828 = vrot.lane.b32.xlu1 %v3819_v23, %s3878_s13  ;;  %2982 = vst [vmem:[#allocation4 + $0x38] sm:$0xff] %v2918_v8 }
 0x36b   :  { %2826 = vrot.lane.b32.xlu0 %v3820_v25, %s3878_s13 }
 0x36d   :  { %2832 = vrot.lane.b32.xlu1 %v3821_v29, %s3878_s13  ;;  %v2737_v36 = vpop.permute.xlu1 %2736 }
 0x36e   :  { %2210 = vmatmul.mubr.bf16.gmra.mrb[136].mxu1 %v4594_v51  ;;  %v2920_v53 = vsel %vm2910_vm3, %v2737_v36, 0.0 }
 0x36f   :  { %2219 = vmatprep.mubr.bf16.mxu1 %v3877_v50  ;;  %2830 = vrot.lane.b32.xlu0 %v3822_v19, %s3878_s13  ;;  %2984 = vst [vmem:[#allocation4 + $0x48] sm:$0xff] %v2920_v53 }
 0x371   :  { %v1951_v28 = vpop.f32.mrb[32].mxu1  ;;  %v2719_v41 = vpop.permute.xlu0 %2718  ;;  %2836 = vrot.lane.b32.xlu1 %v3823_v44, %s3878_s13 }
 0x372   :  { %v1952_v51 = vadd.f32 %v1951_v28, %v4858_v26  ;;  %v1953_v30 = vpop.f32.mrb[33].mxu1  ;;  %v2911_v35 = vsel %vm2910_vm3, %v2719_v41, 0.0 }
 0x373   :  { %v1954_v32 = vadd.f32 %v1953_v30, %v4860_v27  ;;  %v1955_v52 = vpop.f32.mrb[34].mxu1  ;;  %2834 = vrot.lane.b32.xlu0 %v3824_v4, %s3878_s13  ;;  %2975 = vst [vmem:[#allocation4] sm:$0xff] %v2911_v35 }
 0x374   :  { %v1956_v37 = vadd.f32 %v1955_v52, %v4858_v26  ;;  %v1957_v40 = vpop.f32.mrb[35].mxu1 }
 0x375   :  { %v3288_v42 = vpack.c.bf16 %v1954_v32, %v1952_v51  ;;  %v1958_v43 = vadd.f32 %v1957_v40, %v4860_v27  ;;  %v2721_v5 = vpop.permute.xlu0 %2720  ;;  %2840 = vrot.lane.b32.xlu1 %v3825_v55, %s3878_s13 }
 0x376   :  { %2220 = vmatmul.mubr.bf16.gmra.mrb[140].mxu1 %v4592_v39  ;;  %v2912_v48 = vsel %vm2910_vm3, %v2721_v5, 0.0  ;;  %v3826_v39 = vld [vmem:[%s5126_s0 + $0x1e0] sm:$0xff]  ;;  %s3879_s0 = smov [#allocation4]  }
 0x377   :  { %2654 = vst [vmem:[#allocation2] sm:$0xff] %v3288_v42  ;;  %v3289_v45 = vpack.c.bf16 %v1958_v43, %v1956_v37  ;;  %2229 = vmatprep.mubr.bf16.mxu1 %v3877_v50  ;;  %2838 = vrot.lane.b32.xlu0 %v3826_v39, %s3878_s13  ;;  %2976 = vst [vmem:[#allocation4 + $0x8] sm:$0xff] %v2912_v48 }
 0x379   :  { %2655 = vst [vmem:[#allocation2 + $0x8] sm:$0xff] %v3289_v45  ;;  %v1961_v49 = vpop.f32.mrb[36].mxu1  ;;  %v2727_v62 = vpop.permute.xlu0 %2726  ;;  %2844 = vrot.lane.b32.xlu1 %v3827_v38, %s3878_s13 }
 0x37a   :  { %v1962_v56 = vadd.f32 %v1961_v49, %v4858_v26  ;;  %v1963_v57 = vpop.f32.mrb[37].mxu1  ;;  %v2915_v2 = vsel %vm2910_vm3, %v2727_v62, 0.0 }
 0x37b   :  { %v1964_v47 = vadd.f32 %v1963_v57, %v4860_v27  ;;  %v1965_v58 = vpop.f32.mrb[38].mxu1  ;;  %2842 = vrot.lane.b32.xlu0 %v3828_v6, %s3878_s13  ;;  %2979 = vst [vmem:[#allocation4 + $0x20] sm:$0xff] %v2915_v2  ;;  %s3056_s13 = sshll.u32 %s3879_s0, 4  ;;  %s3057_s13 = int_to_ptr.vmem [resolvable:$true] %s3056_s13 }
 0x37c   :  { %v1966_v60 = vadd.f32 %v1965_v58, %v4858_v26  ;;  %v1967_v1 = vpop.f32.mrb[39].mxu1  ;;  %s3829_s11 = scalar_lea.vmem %s3057_s13, 8192  ;;  %p3834_p1 = scmp.lt.s32.totalorder %s3057_s13, %s3057_s13 }
 0x37d   :  { %v3290_v63 = vpack.c.bf16 %v1964_v47, %v1962_v56  ;;  %v1968_v0 = vadd.f32 %v1967_v1, %v4860_v27  ;;  %v2731_v3 = vpop.permute.xlu0 %2730  ;;  %p3830_p0 = scmp.ne.s32.totalorder %s3057_s13, %s3829_s11  ;;  %p3835_p2 = scmp.lt.s32.totalorder %s3829_s11, %s3829_s11 }
 0x37e   :  { %2230 = vmatmul.mubr.bf16.gmra.mrb[144].mxu1 %v4620_v11  ;;  %v2917_v9 = vsel %vm2910_vm3, %v2731_v3, 0.0 }
 0x37f   :  { %2656 = vst [vmem:[#allocation2 + $0x10] sm:$0xff] %v3290_v63  ;;  %v3291_v17 = vpack.c.bf16 %v1968_v0, %v1966_v60  ;;  %2239 = vmatprep.mubr.bf16.mxu1 %v3877_v50  ;;  %2981 = vst [vmem:[#allocation4 + $0x30] sm:$0xff] %v2917_v9  ;;  %p3836_p3 = por %p3835_p2, %p3834_p1 }
 0x381   :  { %2657 = vst [vmem:[#allocation2 + $0x18] sm:$0xff] %v3291_v17  ;;  %v1971_v16 = vpop.f32.mrb[40].mxu1  ;;  %v2735_v21 = vpop.permute.xlu0 %2734  ;;  %p3837_p4 = pnand %p3836_p3, %p3830_p0 }
 0x382   :  { %v1972_v12 = vadd.f32 %v1971_v16, %v4858_v26  ;;  %v1973_v13 = vpop.f32.mrb[41].mxu1  ;;  %v2919_v23 = vsel %vm2910_vm3, %v2735_v21, 0.0 }
 0x383   :  { %v1974_v11 = vadd.f32 %v1973_v13, %v4860_v27  ;;  %v1975_v14 = vpop.f32.mrb[42].mxu1  ;;  %2983 = vst [vmem:[#allocation4 + $0x40] sm:$0xff] %v2919_v23  ;;  %v2741_v28 = vpop.permute.xlu1 %2740 }
 0x384   :  { %v1976_v15 = vadd.f32 %v1975_v14, %v4858_v26  ;;  %v1977_v20 = vpop.f32.mrb[43].mxu1  ;;  %v2922_v29 = vsel %vm2910_vm3, %v2741_v28, 0.0 }
 0x385   :  { %v3292_v33 = vpack.c.bf16 %v1974_v11, %v1972_v12  ;;  %v1978_v22 = vadd.f32 %v1977_v20, %v4860_v27  ;;  %v2739_v19 = vpop.permute.xlu0 %2738  ;;  %2986 = vst [vmem:[#allocation4 + $0x58] sm:$0xff] %v2922_v29 }
 0x386   :  { %2240 = vmatmul.mubr.bf16.gmra.mrb[148].mxu1 %v4618_v10  ;;  %v2921_v30 = vsel %vm2910_vm3, %v2739_v19, 0.0 }
 0x387   :  { %2658 = vst [vmem:[#allocation2 + $0x20] sm:$0xff] %v3292_v33  ;;  %v3293_v25 = vpack.c.bf16 %v1978_v22, %v1976_v15  ;;  %2249 = vmatprep.mubr.bf16.mxu1 %v3877_v50  ;;  %2985 = vst [vmem:[#allocation4 + $0x50] sm:$0xff] %v2921_v30  ;;  %v2745_v37 = vpop.permute.xlu1 %2744 }
 0x388   :  { %v2924_v41 = vsel %vm2910_vm3, %v2745_v37, 0.0 }
 0x389   :  { %2659 = vst [vmem:[#allocation2 + $0x28] sm:$0xff] %v3293_v25  ;;  %v1981_v51 = vpop.f32.mrb[44].mxu1  ;;  %v2743_v42 = vpop.permute.xlu0 %2742  ;;  %2988 = vst [vmem:[#allocation4 + $0x68] sm:$0xff] %v2924_v41 }
 0x38a   :  { %v1982_v32 = vadd.f32 %v1981_v51, %v4858_v26  ;;  %v1983_v52 = vpop.f32.mrb[45].mxu1  ;;  %v2923_v44 = vsel %vm2910_vm3, %v2743_v42, 0.0 }
 0x38b   :  { %v1984_v10 = vadd.f32 %v1983_v52, %v4860_v27  ;;  %v1985_v54 = vpop.f32.mrb[46].mxu1  ;;  %2987 = vst [vmem:[#allocation4 + $0x60] sm:$0xff] %v2923_v44  ;;  %v2749_v45 = vpop.permute.xlu1 %2748 }
 0x38c   :  { %v1986_v40 = vadd.f32 %v1985_v54, %v4858_v26  ;;  %v1987_v18 = vpop.f32.mrb[47].mxu1  ;;  %v2926_v34 = vsel %vm2910_vm3, %v2749_v45, 0.0 }
 0x38d   :  { %v3294_v43 = vpack.c.bf16 %v1984_v10, %v1982_v32  ;;  %v1988_v35 = vadd.f32 %v1987_v18, %v4860_v27  ;;  %v2747_v46 = vpop.permute.xlu0 %2746  ;;  %2990 = vst [vmem:[#allocation4 + $0x78] sm:$0xff] %v2926_v34 }
 0x38e   :  { %2250 = vmatmul.mubr.bf16.gmra.mrb[152].mxu1 %v4646_v24  ;;  %v2925_v49 = vsel %vm2910_vm3, %v2747_v46, 0.0 }
 0x38f   :  { %2660 = vst [vmem:[#allocation2 + $0x30] sm:$0xff] %v3294_v43  ;;  %v3295_v4 = vpack.c.bf16 %v1988_v35, %v1986_v40  ;;  %2259 = vmatprep.mubr.bf16.mxu1 %v3877_v50  ;;  %2989 = vst [vmem:[#allocation4 + $0x70] sm:$0xff] %v2925_v49  ;;  %v2753_v56 = vpop.permute.xlu1 %2752 }
 0x390   :  { %v2928_v47 = vsel %vm2910_vm3, %v2753_v56, 0.0 }
 0x391   :  { %2661 = vst [vmem:[#allocation2 + $0x38] sm:$0xff] %v3295_v4  ;;  %v1991_v5 = vpop.f32.mrb[48].mxu1  ;;  %v2751_v58 = vpop.permute.xlu0 %2750  ;;  %2992 = vst [vmem:[#allocation4 + $0x88] sm:$0xff] %v2928_v47 }
 0x392   :  { %v1992_v48 = vadd.f32 %v1991_v5, %v4858_v26  ;;  %v1993_v55 = vpop.f32.mrb[49].mxu1  ;;  %v2927_v1 = vsel %vm2910_vm3, %v2751_v58, 0.0 }
 0x393   :  { %v1994_v24 = vadd.f32 %v1993_v55, %v4860_v27  ;;  %v1995_v39 = vpop.f32.mrb[50].mxu1  ;;  %2991 = vst [vmem:[#allocation4 + $0x80] sm:$0xff] %v2927_v1  ;;  %v2757_v62 = vpop.permute.xlu1 %2756 }
 0x394   :  { %v1996_v57 = vadd.f32 %v1995_v39, %v4858_v26  ;;  %v1997_v50 = vpop.f32.mrb[51].mxu1  ;;  %v2930_v63 = vsel %vm2910_vm3, %v2757_v62, 0.0 }
 0x395   :  { %v3296_v59 = vpack.c.bf16 %v1994_v24, %v1992_v48  ;;  %v1998_v60 = vadd.f32 %v1997_v50, %v4860_v27  ;;  %v2755_v0 = vpop.permute.xlu0 %2754  ;;  %2994 = vst [vmem:[#allocation4 + $0x98] sm:$0xff] %v2930_v63 }
 0x396   :  { %2260 = vmatmul.mubr.bf16.gmra.mrb[156].mxu1 %v4644_v31  ;;  %v2929_v38 = vsel %vm2910_vm3, %v2755_v0, 0.0 }
 0x397   :  { %2662 = vst [vmem:[#allocation2 + $0x40] sm:$0xff] %v3296_v59  ;;  %v3297_v61 = vpack.c.bf16 %v1998_v60, %v1996_v57  ;;  %2993 = vst [vmem:[#allocation4 + $0x90] sm:$0xff] %v2929_v38  ;;  %v2761_v31 = vpop.permute.xlu1 %2760 }
 0x398   :  { %v2932_v9 = vsel %vm2910_vm3, %v2761_v31, 0.0 }
 0x399   :  { %2663 = vst [vmem:[#allocation2 + $0x48] sm:$0xff] %v3297_v61  ;;  %v2001_v2 = vpop.f32.mrb[52].mxu1  ;;  %v2759_v12 = vpop.permute.xlu0 %2758  ;;  %2996 = vst [vmem:[#allocation4 + $0xa8] sm:$0xff] %v2932_v9 }
 0x39a   :  { %v2002_v6 = vadd.f32 %v2001_v2, %v4858_v26  ;;  %v2003_v17 = vpop.f32.mrb[53].mxu1  ;;  %v2931_v14 = vsel %vm2910_vm3, %v2759_v12, 0.0 }
 0x39b   :  { %v2004_v7 = vadd.f32 %v2003_v17, %v4860_v27  ;;  %v2005_v8 = vpop.f32.mrb[54].mxu1  ;;  %2995 = vst [vmem:[#allocation4 + $0xa0] sm:$0xff] %v2931_v14  ;;  %v2765_v15 = vpop.permute.xlu1 %2764 }
 0x39c   :  { %v2006_v3 = vadd.f32 %v2005_v8, %v4858_v26  ;;  %v2007_v16 = vpop.f32.mrb[55].mxu1  ;;  %v2934_v20 = vsel %vm2910_vm3, %v2765_v15, 0.0 }
 0x39d   :  { %v3298_v13 = vpack.c.bf16 %v2004_v7, %v2002_v6  ;;  %v2008_v11 = vadd.f32 %v2007_v16, %v4860_v27  ;;  %v2763_v53 = vpop.permute.xlu0 %2762  ;;  %2998 = vst [vmem:[#allocation4 + $0xb8] sm:$0xff] %v2934_v20 }
 0x39e   :  { %v2933_v33 = vsel %vm2910_vm3, %v2763_v53, 0.0 }
 0x39f   :  { %2664 = vst [vmem:[#allocation2 + $0x50] sm:$0xff] %v3298_v13  ;;  %v3299_v36 = vpack.c.bf16 %v2008_v11, %v2006_v3  ;;  %2997 = vst [vmem:[#allocation4 + $0xb0] sm:$0xff] %v2933_v33  ;;  %v2769_v29 = vpop.permute.xlu1 %2768 }
 0x3a0   :  { %v2936_v30 = vsel %vm2910_vm3, %v2769_v29, 0.0 }
 0x3a1   :  { %2665 = vst [vmem:[#allocation2 + $0x58] sm:$0xff] %v3299_v36  ;;  %v2011_v21 = vpop.f32.mrb[56].mxu1  ;;  %v2767_v32 = vpop.permute.xlu0 %2766  ;;  %3000 = vst [vmem:[#allocation4 + $0xc8] sm:$0xff] %v2936_v30 }
 0x3a2   :  { %v2012_v22 = vadd.f32 %v2011_v21, %v4858_v26  ;;  %v2013_v23 = vpop.f32.mrb[57].mxu1  ;;  %v2935_v54 = vsel %vm2910_vm3, %v2767_v32, 0.0 }
 0x3a3   :  { %v2014_v25 = vadd.f32 %v2013_v23, %v4860_v27  ;;  %v2015_v28 = vpop.f32.mrb[58].mxu1  ;;  %2999 = vst [vmem:[#allocation4 + $0xc0] sm:$0xff] %v2935_v54  ;;  %v2773_v40 = vpop.permute.xlu1 %2772 }
 0x3a4   :  { %v2016_v19 = vadd.f32 %v2015_v28, %v4858_v26  ;;  %v2017_v51 = vpop.f32.mrb[59].mxu1  ;;  %v2938_v18 = vsel %vm2910_vm3, %v2773_v40, 0.0 }
 0x3a5   :  { %v3300_v52 = vpack.c.bf16 %v2014_v25, %v2012_v22  ;;  %v2018_v10 = vadd.f32 %v2017_v51, %v4860_v27  ;;  %v2771_v41 = vpop.permute.xlu0 %2770  ;;  %3002 = vst [vmem:[#allocation4 + $0xd8] sm:$0xff] %v2938_v18 }
 0x3a6   :  { %v2937_v43 = vsel %vm2910_vm3, %v2771_v41, 0.0 }
 0x3a7   :  { %2666 = vst [vmem:[#allocation2 + $0x60] sm:$0xff] %v3300_v52  ;;  %v3301_v37 = vpack.c.bf16 %v2018_v10, %v2016_v19  ;;  %3001 = vst [vmem:[#allocation4 + $0xd0] sm:$0xff] %v2937_v43  ;;  %v2777_v34 = vpop.permute.xlu1 %2776 }
 0x3a8   :  { %v2940_v49 = vsel %vm2910_vm3, %v2777_v34, 0.0 }
 0x3a9   :  { %2667 = vst [vmem:[#allocation2 + $0x68] sm:$0xff] %v3301_v37  ;;  %v2021_v42 = vpop.f32.mrb[60].mxu1  ;;  %v2775_v48 = vpop.permute.xlu0 %2774  ;;  %3004 = vst [vmem:[#allocation4 + $0xe8] sm:$0xff] %v2940_v49 }
 0x3aa   :  { %v2022_v35 = vadd.f32 %v2021_v42, %v4858_v26  ;;  %v2023_v44 = vpop.f32.mrb[61].mxu1  ;;  %v2939_v39 = vsel %vm2910_vm3, %v2775_v48, 0.0 }
 0x3ab   :  { %v2024_v4 = vadd.f32 %v2023_v44, %v4860_v27  ;;  %v2025_v45 = vpop.f32.mrb[62].mxu1  ;;  %3003 = vst [vmem:[#allocation4 + $0xe0] sm:$0xff] %v2939_v39  ;;  %v2781_v57 = vpop.permute.xlu1 %2780 }
 0x3ac   :  { %v2026_v46 = vadd.f32 %v2025_v45, %v4858_v26  ;;  %v2027_v5 = vpop.f32.mrb[63].mxu1  ;;  %v2942_v50 = vsel %vm2910_vm3, %v2781_v57, 0.0 }
 0x3ad   :  { %v3302_v55 = vpack.c.bf16 %v2024_v4, %v2022_v35  ;;  %v2028_v24 = vadd.f32 %v2027_v5, %v4860_v27  ;;  %v2779_v47 = vpop.permute.xlu0 %2778  ;;  %3006 = vst [vmem:[#allocation4 + $0xf8] sm:$0xff] %v2942_v50 }
 0x3ae   :  { %v2941_v59 = vsel %vm2910_vm3, %v2779_v47, 0.0 }
 0x3af   :  { %2668 = vst [vmem:[#allocation2 + $0x70] sm:$0xff] %v3302_v55  ;;  %v3303_v56 = vpack.c.bf16 %v2028_v24, %v2026_v46  ;;  %3005 = vst [vmem:[#allocation4 + $0xf0] sm:$0xff] %v2941_v59  ;;  %v2785_v63 = vpop.permute.xlu1 %2784 }
 0x3b0   :  { %v2944_v38 = vsel %vm2910_vm3, %v2785_v63, 0.0 }
 0x3b1   :  { %2669 = vst [vmem:[#allocation2 + $0x78] sm:$0xff] %v3303_v56  ;;  %v2031_v58 = vpop.f32.mrb[64].mxu1  ;;  %v2783_v6 = vpop.permute.xlu0 %2782  ;;  %3008 = vst [vmem:[#allocation4 + $0x108] sm:$0xff] %v2944_v38 }
 0x3b2   :  { %v2032_v60 = vadd.f32 %v2031_v58, %v4858_v26  ;;  %v2033_v1 = vpop.f32.mrb[65].mxu1  ;;  %v2943_v8 = vsel %vm2910_vm3, %v2783_v6, 0.0 }
 0x3b3   :  { %v2034_v61 = vadd.f32 %v2033_v1, %v4860_v27  ;;  %v2035_v62 = vpop.f32.mrb[66].mxu1  ;;  %3007 = vst [vmem:[#allocation4 + $0x100] sm:$0xff] %v2943_v8  ;;  %v2789_v3 = vpop.permute.xlu1 %2788 }
 0x3b4   :  { %v2036_v0 = vadd.f32 %v2035_v62, %v4858_v26  ;;  %v2037_v2 = vpop.f32.mrb[67].mxu1  ;;  %v2946_v16 = vsel %vm2910_vm3, %v2789_v3, 0.0 }
 0x3b5   :  { %v3304_v17 = vpack.c.bf16 %v2034_v61, %v2032_v60  ;;  %v2038_v7 = vadd.f32 %v2037_v2, %v4860_v27  ;;  %v2787_v9 = vpop.permute.xlu0 %2786  ;;  %3010 = vst [vmem:[#allocation4 + $0x118] sm:$0xff] %v2946_v16 }
 0x3b6   :  { %v2945_v13 = vsel %vm2910_vm3, %v2787_v9, 0.0 }
 0x3b7   :  { %2670 = vst [vmem:[#allocation2 + $0x80] sm:$0xff] %v3304_v17  ;;  %v3305_v31 = vpack.c.bf16 %v2038_v7, %v2036_v0  ;;  %3009 = vst [vmem:[#allocation4 + $0x110] sm:$0xff] %v2945_v13  ;;  %v2793_v20 = vpop.permute.xlu1 %2792 }
 0x3b8   :  { %v2948_v33 = vsel %vm2910_vm3, %v2793_v20, 0.0 }
 0x3b9   :  { %2671 = vst [vmem:[#allocation2 + $0x88] sm:$0xff] %v3305_v31  ;;  %v2041_v12 = vpop.f32.mrb[68].mxu1  ;;  %v2791_v22 = vpop.permute.xlu0 %2790  ;;  %3012 = vst [vmem:[#allocation4 + $0x128] sm:$0xff] %v2948_v33 }
 0x3ba   :  { %v2042_v11 = vadd.f32 %v2041_v12, %v4858_v26  ;;  %v2043_v14 = vpop.f32.mrb[69].mxu1  ;;  %v2947_v28 = vsel %vm2910_vm3, %v2791_v22, 0.0 }
 0x3bb   :  { %v2044_v36 = vadd.f32 %v2043_v14, %v4860_v27  ;;  %v2045_v15 = vpop.f32.mrb[70].mxu1  ;;  %3011 = vst [vmem:[#allocation4 + $0x120] sm:$0xff] %v2947_v28  ;;  %v2797_v19 = vpop.permute.xlu1 %2796 }
 0x3bc   :  { %v2046_v53 = vadd.f32 %v2045_v15, %v4858_v26  ;;  %v2047_v21 = vpop.f32.mrb[71].mxu1  ;;  %v2950_v51 = vsel %vm2910_vm3, %v2797_v19, 0.0 }
 0x3bd   :  { %v3306_v23 = vpack.c.bf16 %v2044_v36, %v2042_v11  ;;  %v2048_v25 = vadd.f32 %v2047_v21, %v4860_v27  ;;  %v2795_v30 = vpop.permute.xlu0 %2794  ;;  %3014 = vst [vmem:[#allocation4 + $0x138] sm:$0xff] %v2950_v51 }
 0x3be   :  { %v2949_v52 = vsel %vm2910_vm3, %v2795_v30, 0.0 }
 0x3bf   :  { %2672 = vst [vmem:[#allocation2 + $0x90] sm:$0xff] %v3306_v23  ;;  %v3307_v29 = vpack.c.bf16 %v2048_v25, %v2046_v53  ;;  %3013 = vst [vmem:[#allocation4 + $0x130] sm:$0xff] %v2949_v52  ;;  %v2801_v18 = vpop.permute.xlu1 %2800 }
 0x3c0   :  { %v2952_v43 = vsel %vm2910_vm3, %v2801_v18, 0.0 }
 0x3c1   :  { %2673 = vst [vmem:[#allocation2 + $0x98] sm:$0xff] %v3307_v29  ;;  %v2051_v32 = vpop.f32.mrb[72].mxu1  ;;  %v2799_v35 = vpop.permute.xlu0 %2798  ;;  %3016 = vst [vmem:[#allocation4 + $0x148] sm:$0xff] %v2952_v43 }
 0x3c2   :  { %v2052_v10 = vadd.f32 %v2051_v32, %v4858_v26  ;;  %v2053_v54 = vpop.f32.mrb[73].mxu1  ;;  %v2951_v45 = vsel %vm2910_vm3, %v2799_v35, 0.0 }
 0x3c3   :  { %v2054_v37 = vadd.f32 %v2053_v54, %v4860_v27  ;;  %v2055_v40 = vpop.f32.mrb[74].mxu1  ;;  %3015 = vst [vmem:[#allocation4 + $0x140] sm:$0xff] %v2951_v45  ;;  %v2805_v46 = vpop.permute.xlu1 %2804 }
 0x3c4   :  { %v2056_v41 = vadd.f32 %v2055_v40, %v4858_v26  ;;  %v2057_v42 = vpop.f32.mrb[75].mxu1  ;;  %v2954_v5 = vsel %vm2910_vm3, %v2805_v46, 0.0 }
 0x3c5   :  { %v3308_v44 = vpack.c.bf16 %v2054_v37, %v2052_v10  ;;  %v2058_v4 = vadd.f32 %v2057_v42, %v4860_v27  ;;  %v2803_v49 = vpop.permute.xlu0 %2802  ;;  %3018 = vst [vmem:[#allocation4 + $0x158] sm:$0xff] %v2954_v5 }
 0x3c6   :  { %v2953_v55 = vsel %vm2910_vm3, %v2803_v49, 0.0 }
 0x3c7   :  { %2674 = vst [vmem:[#allocation2 + $0xa0] sm:$0xff] %v3308_v44  ;;  %v3309_v34 = vpack.c.bf16 %v2058_v4, %v2056_v41  ;;  %3017 = vst [vmem:[#allocation4 + $0x150] sm:$0xff] %v2953_v55  ;;  %v2809_v50 = vpop.permute.xlu1 %2808 }
 0x3c8   :  { %v2956_v59 = vsel %vm2910_vm3, %v2809_v50, 0.0 }
 0x3c9   :  { %2675 = vst [vmem:[#allocation2 + $0xa8] sm:$0xff] %v3309_v34  ;;  %v2061_v48 = vpop.f32.mrb[76].mxu1  ;;  %v2807_v60 = vpop.permute.xlu0 %2806  ;;  %3020 = vst [vmem:[#allocation4 + $0x168] sm:$0xff] %v2956_v59 }
 0x3ca   :  { %v2062_v24 = vadd.f32 %v2061_v48, %v4858_v26  ;;  %v2063_v39 = vpop.f32.mrb[77].mxu1  ;;  %v2955_v62 = vsel %vm2910_vm3, %v2807_v60, 0.0 }
 0x3cb   :  { %v2064_v56 = vadd.f32 %v2063_v39, %v4860_v27  ;;  %v2065_v57 = vpop.f32.mrb[78].mxu1  ;;  %3019 = vst [vmem:[#allocation4 + $0x160] sm:$0xff] %v2955_v62  ;;  %v2813_v0 = vpop.permute.xlu1 %2812 }
 0x3cc   :  { %v2066_v47 = vadd.f32 %v2065_v57, %v4858_v26  ;;  %v2067_v58 = vpop.f32.mrb[79].mxu1  ;;  %v2958_v2 = vsel %vm2910_vm3, %v2813_v0, 0.0 }
 0x3cd   :  { %v3310_v1 = vpack.c.bf16 %v2064_v56, %v2062_v24  ;;  %v2068_v61 = vadd.f32 %v2067_v58, %v4860_v27  ;;  %v2811_v38 = vpop.permute.xlu0 %2810  ;;  %3022 = vst [vmem:[#allocation4 + $0x178] sm:$0xff] %v2958_v2 }
 0x3ce   :  { %v2957_v17 = vsel %vm2910_vm3, %v2811_v38, 0.0 }
 0x3cf   :  { %2676 = vst [vmem:[#allocation2 + $0xb0] sm:$0xff] %v3310_v1  ;;  %v3311_v63 = vpack.c.bf16 %v2068_v61, %v2066_v47  ;;  %3021 = vst [vmem:[#allocation4 + $0x170] sm:$0xff] %v2957_v17  ;;  %v2817_v16 = vpop.permute.xlu1 %2816 }
 0x3d0   :  { %v2960_v13 = vsel %vm2910_vm3, %v2817_v16, 0.0 }
 0x3d1   :  { %2677 = vst [vmem:[#allocation2 + $0xb8] sm:$0xff] %v3311_v63  ;;  %v2071_v6 = vpop.f32.mrb[80].mxu1  ;;  %v2815_v11 = vpop.permute.xlu0 %2814  ;;  %3024 = vst [vmem:[#allocation4 + $0x188] sm:$0xff] %v2960_v13 }
 0x3d2   :  { %v2072_v7 = vadd.f32 %v2071_v6, %v4858_v26  ;;  %v2073_v8 = vpop.f32.mrb[81].mxu1  ;;  %v2959_v15 = vsel %vm2910_vm3, %v2815_v11, 0.0 }
 0x3d3   :  { %v2074_v31 = vadd.f32 %v2073_v8, %v4860_v27  ;;  %v2075_v3 = vpop.f32.mrb[82].mxu1  ;;  %3023 = vst [vmem:[#allocation4 + $0x180] sm:$0xff] %v2959_v15  ;;  %v2821_v53 = vpop.permute.xlu1 %2820 }
 0x3d4   :  { %v2076_v9 = vadd.f32 %v2075_v3, %v4858_v26  ;;  %v2077_v12 = vpop.f32.mrb[83].mxu1  ;;  %v2962_v21 = vsel %vm2910_vm3, %v2821_v53, 0.0 }
 0x3d5   :  { %v3312_v14 = vpack.c.bf16 %v2074_v31, %v2072_v7  ;;  %v2078_v36 = vadd.f32 %v2077_v12, %v4860_v27  ;;  %v2819_v33 = vpop.permute.xlu0 %2818  ;;  %3026 = vst [vmem:[#allocation4 + $0x198] sm:$0xff] %v2962_v21 }
 0x3d6   :  { %v2961_v23 = vsel %vm2910_vm3, %v2819_v33, 0.0 }
 0x3d7   :  { %2678 = vst [vmem:[#allocation2 + $0xc0] sm:$0xff] %v3312_v14  ;;  %v3313_v20 = vpack.c.bf16 %v2078_v36, %v2076_v9  ;;  %3025 = vst [vmem:[#allocation4 + $0x190] sm:$0xff] %v2961_v23  ;;  %v2825_v51 = vpop.permute.xlu1 %2824 }
 0x3d8   :  { %v2964_v52 = vsel %vm2910_vm3, %v2825_v51, 0.0 }
 0x3d9   :  { %2679 = vst [vmem:[#allocation2 + $0xc8] sm:$0xff] %v3313_v20  ;;  %v2081_v22 = vpop.f32.mrb[84].mxu1  ;;  %v2823_v10 = vpop.permute.xlu0 %2822  ;;  %3028 = vst [vmem:[#allocation4 + $0x1a8] sm:$0xff] %v2964_v52 }
 0x3da   :  { %v2082_v25 = vadd.f32 %v2081_v22, %v4858_v26  ;;  %v2083_v28 = vpop.f32.mrb[85].mxu1  ;;  %v2963_v40 = vsel %vm2910_vm3, %v2823_v10, 0.0 }
 0x3db   :  { %v2084_v29 = vadd.f32 %v2083_v28, %v4860_v27  ;;  %v2085_v19 = vpop.f32.mrb[86].mxu1  ;;  %3027 = vst [vmem:[#allocation4 + $0x1a0] sm:$0xff] %v2963_v40  ;;  %v2829_v41 = vpop.permute.xlu1 %2828 }
 0x3dc   :  { %v2086_v30 = vadd.f32 %v2085_v19, %v4858_v26  ;;  %v2087_v32 = vpop.f32.mrb[87].mxu1  ;;  %v2966_v42 = vsel %vm2910_vm3, %v2829_v41, 0.0 }
 0x3dd   :  { %v3314_v54 = vpack.c.bf16 %v2084_v29, %v2082_v25  ;;  %v2088_v37 = vadd.f32 %v2087_v32, %v4860_v27  ;;  %v2827_v43 = vpop.permute.xlu0 %2826  ;;  %3030 = vst [vmem:[#allocation4 + $0x1b8] sm:$0xff] %v2966_v42 }
 0x3de   :  { %v2965_v44 = vsel %vm2910_vm3, %v2827_v43, 0.0 }
 0x3df   :  { %2680 = vst [vmem:[#allocation2 + $0xd0] sm:$0xff] %v3314_v54  ;;  %v3315_v18 = vpack.c.bf16 %v2088_v37, %v2086_v30  ;;  %3029 = vst [vmem:[#allocation4 + $0x1b0] sm:$0xff] %v2965_v44  ;;  %v2833_v5 = vpop.permute.xlu1 %2832 }
 0x3e0   :  { %v2968_v55 = vsel %vm2910_vm3, %v2833_v5, 0.0 }
 0x3e1   :  { %2681 = vst [vmem:[#allocation2 + $0xd8] sm:$0xff] %v3315_v18  ;;  %v2091_v35 = vpop.f32.mrb[88].mxu1  ;;  %v2831_v24 = vpop.permute.xlu0 %2830  ;;  %3032 = vst [vmem:[#allocation4 + $0x1c8] sm:$0xff] %v2968_v55 }
 0x3e2   :  { %v2092_v4 = vadd.f32 %v2091_v35, %v4858_v26  ;;  %v2093_v45 = vpop.f32.mrb[89].mxu1  ;;  %v2967_v57 = vsel %vm2910_vm3, %v2831_v24, 0.0 }
 0x3e3   :  { %v2094_v34 = vadd.f32 %v2093_v45, %v4860_v27  ;;  %v2095_v46 = vpop.f32.mrb[90].mxu1  ;;  %3031 = vst [vmem:[#allocation4 + $0x1c0] sm:$0xff] %v2967_v57  ;;  %v2837_v47 = vpop.permute.xlu1 %2836 }
 0x3e4   :  { %v2096_v49 = vadd.f32 %v2095_v46, %v4858_v26  ;;  %v2097_v48 = vpop.f32.mrb[91].mxu1  ;;  %v2970_v58 = vsel %vm2910_vm3, %v2837_v47, 0.0 }
 0x3e5   :  { %v3316_v39 = vpack.c.bf16 %v2094_v34, %v2092_v4  ;;  %v2098_v56 = vadd.f32 %v2097_v48, %v4860_v27  ;;  %v2835_v59 = vpop.permute.xlu0 %2834  ;;  %3034 = vst [vmem:[#allocation4 + $0x1d8] sm:$0xff] %v2970_v58 }
 0x3e6   :  { %v2969_v1 = vsel %vm2910_vm3, %v2835_v59, 0.0 }
 0x3e7   :  { %2682 = vst [vmem:[#allocation2 + $0xe0] sm:$0xff] %v3316_v39  ;;  %v3317_v50 = vpack.c.bf16 %v2098_v56, %v2096_v49  ;;  %3033 = vst [vmem:[#allocation4 + $0x1d0] sm:$0xff] %v2969_v1  ;;  %v2841_v2 = vpop.permute.xlu1 %2840 }
 0x3e8   :  { %v2972_v17 = vsel %vm2910_vm3, %v2841_v2, 0.0 }
 0x3e9   :  { %2683 = vst [vmem:[#allocation2 + $0xe8] sm:$0xff] %v3317_v50  ;;  %v2101_v60 = vpop.f32.mrb[92].mxu1  ;;  %v2839_v7 = vpop.permute.xlu0 %2838  ;;  %3036 = vst [vmem:[#allocation4 + $0x1e8] sm:$0xff] %v2972_v17 }
 0x3ea   :  { %v2102_v61 = vadd.f32 %v2101_v60, %v4858_v26  ;;  %v2103_v62 = vpop.f32.mrb[93].mxu1  ;;  %v2971_v3 = vsel %vm2910_vm3, %v2839_v7, 0.0 }
 0x3eb   :  { %v2104_v63 = vadd.f32 %v2103_v62, %v4860_v27  ;;  %v2105_v0 = vpop.f32.mrb[94].mxu1  ;;  %3035 = vst [vmem:[#allocation4 + $0x1e0] sm:$0xff] %v2971_v3  ;;  %v2845_v9 = vpop.permute.xlu1 %2844 }
 0x3ec   :  { %v2106_v38 = vadd.f32 %v2105_v0, %v4858_v26  ;;  %v2107_v6 = vpop.f32.mrb[95].mxu1  ;;  %v2974_v12 = vsel %vm2910_vm3, %v2845_v9, 0.0 }
 0x3ed   :  { %v3318_v8 = vpack.c.bf16 %v2104_v63, %v2102_v61  ;;  %v2108_v31 = vadd.f32 %v2107_v6, %v4860_v27  ;;  %v2843_v13 = vpop.permute.xlu0 %2842  ;;  %3038 = vst [vmem:[#allocation4 + $0x1f8] sm:$0xff] %v2974_v12 }
 0x3ee   :  { %v2973_v14 = vsel %vm2910_vm3, %v2843_v13, 0.0 }
 0x3ef   :  { %2684 = vst [vmem:[#allocation2 + $0xf0] sm:$0xff] %v3318_v8  ;;  %v3319_v16 = vpack.c.bf16 %v2108_v31, %v2106_v38  ;;  %3037 = vst [vmem:[#allocation4 + $0x1f0] sm:$0xff] %v2973_v14 }
 0x3f1   :  { %2685 = vst [vmem:[#allocation2 + $0xf8] sm:$0xff] %v3319_v16  ;;  %v2111_v11 = vpop.f32.mrb[96].mxu1 }
 0x3f2   :  { %v2112_v36 = vadd.f32 %v2111_v11, %v4858_v26  ;;  %v2113_v15 = vpop.f32.mrb[97].mxu1 }
 0x3f3   :  { %v2114_v20 = vadd.f32 %v2113_v15, %v4860_v27  ;;  %v2115_v53 = vpop.f32.mrb[98].mxu1 }
 0x3f4   :  { %3840 = shalt.err (!%p3837_p4)
}
 0x3f5   :  { %s3841_s14 = scalar_lea.hbm %s5136_s10, 8192 }
 0x3f6   :  { %p3842_p5 = scmp.ne.s32.totalorder %s5136_s10, %s3841_s14  ;;  %p3845_p6 = scmp.lt.u32.totalorder %s3841_s14, %s5136_s10 }
 0x3f8   :  { %p3847_p7 = pnand %p3845_p6, %p3842_p5 }
 0x3fa   :  { %3850 = shalt.err (!%p3847_p7)
}
 0x3fb   :  { %s3880_s19 = smov 128   ;;  %s3881_s2 = smov 8   ;;  %v2116_v21 = vadd.f32 %v2115_v53, %v4858_v26  ;;  %v2117_v33 = vpop.f32.mrb[99].mxu1  ;;  %v3320_v22 = vpack.c.bf16 %v2114_v20, %v2112_v36 }
 0x3fc   :  { %3062 = dma.vmem_to_hbm [thread:$0]  %s3057_s13, 8192, %s5136_s10, [#allocation5], %s3880_s19, %s3880_s19, %s3881_s2   ;;  %v2118_v23 = vadd.f32 %v2117_v33, %v4860_v27  ;;  %v2121_v28 = vpop.f32.mrb[100].mxu1 }
 0x3fd   :  { %2686 = vst [vmem:[#allocation2 + $0x100] sm:$0xff] %v3320_v22  ;;  %v2122_v29 = vadd.f32 %v2121_v28, %v4858_v26  ;;  %v2123_v19 = vpop.f32.mrb[101].mxu1  ;;  %s3882_s10 = smov [#allocation2]  }
 0x3fe   :  { %v3321_v25 = vpack.c.bf16 %v2118_v23, %v2116_v21  ;;  %v2124_v51 = vadd.f32 %v2123_v19, %v4860_v27  ;;  %v2125_v30 = vpop.f32.mrb[102].mxu1  ;;  %s3044_s1 = sshll.u32 %s3882_s10, 4  ;;  %s3045_s1 = int_to_ptr.vmem [resolvable:$true] %s3044_s1 }
 0x3ff   :  { %v2126_v32 = vadd.f32 %v2125_v30, %v4858_v26  ;;  %v2127_v52 = vpop.f32.mrb[103].mxu1  ;;  %s3851_s21 = scalar_lea.vmem %s3045_s1, 8192  ;;  %p3856_p9 = scmp.lt.s32.totalorder %s3045_s1, %s3045_s1 }
 0x400   :  { %2687 = vst [vmem:[#allocation2 + $0x108] sm:$0xff] %v3321_v25  ;;  %v3322_v10 = vpack.c.bf16 %v2124_v51, %v2122_v29  ;;  %v2128_v54 = vadd.f32 %v2127_v52, %v4860_v27  ;;  %p3852_p8 = scmp.ne.s32.totalorder %s3045_s1, %s3851_s21  ;;  %p3857_p10 = scmp.lt.s32.totalorder %s3851_s21, %s3851_s21 }
 0x401   :  { %v2131_v40 = vpop.f32.mrb[104].mxu1 }
 0x402   :  { %2688 = vst [vmem:[#allocation2 + $0x110] sm:$0xff] %v3322_v10  ;;  %v3323_v37 = vpack.c.bf16 %v2128_v54, %v2126_v32  ;;  %v2132_v18 = vadd.f32 %v2131_v40, %v4858_v26  ;;  %v2133_v41 = vpop.f32.mrb[105].mxu1  ;;  %p3858_p11 = por %p3857_p10, %p3856_p9 }
 0x403   :  { %v2134_v42 = vadd.f32 %v2133_v41, %v4860_v27  ;;  %v2135_v43 = vpop.f32.mrb[106].mxu1 }
 0x404   :  { %2689 = vst [vmem:[#allocation2 + $0x118] sm:$0xff] %v3323_v37  ;;  %v2136_v35 = vadd.f32 %v2135_v43, %v4858_v26  ;;  %v2137_v44 = vpop.f32.mrb[107].mxu1  ;;  %p3859_p12 = pnand %p3858_p11, %p3852_p8 }
 0x405   :  { %v3324_v4 = vpack.c.bf16 %v2134_v42, %v2132_v18  ;;  %v2138_v45 = vadd.f32 %v2137_v44, %v4860_v27 }
 0x407   :  { %2690 = vst [vmem:[#allocation2 + $0x120] sm:$0xff] %v3324_v4  ;;  %v3325_v34 = vpack.c.bf16 %v2138_v45, %v2136_v35 }
 0x409   :  { %2691 = vst [vmem:[#allocation2 + $0x128] sm:$0xff] %v3325_v34  ;;  %v2141_v46 = vpop.f32.mrb[108].mxu1 }
 0x40a   :  { %v2142_v5 = vadd.f32 %v2141_v46, %v4858_v26  ;;  %v2143_v49 = vpop.f32.mrb[109].mxu1 }
 0x40b   :  { %v2144_v48 = vadd.f32 %v2143_v49, %v4860_v27  ;;  %v2145_v55 = vpop.f32.mrb[110].mxu1 }
 0x40c   :  { %v2146_v24 = vadd.f32 %v2145_v55, %v4858_v26  ;;  %v2147_v39 = vpop.f32.mrb[111].mxu1 }
 0x40d   :  { %v3326_v56 = vpack.c.bf16 %v2144_v48, %v2142_v5  ;;  %v2148_v57 = vadd.f32 %v2147_v39, %v4860_v27 }
 0x40f   :  { %2692 = vst [vmem:[#allocation2 + $0x130] sm:$0xff] %v3326_v56  ;;  %v3327_v50 = vpack.c.bf16 %v2148_v57, %v2146_v24 }
 0x411   :  { %2693 = vst [vmem:[#allocation2 + $0x138] sm:$0xff] %v3327_v50  ;;  %v2151_v47 = vpop.f32.mrb[112].mxu1 }
 0x412   :  { %v2152_v58 = vadd.f32 %v2151_v47, %v4858_v26  ;;  %v2153_v59 = vpop.f32.mrb[113].mxu1 }
 0x413   :  { %v2154_v60 = vadd.f32 %v2153_v59, %v4860_v27  ;;  %v2155_v1 = vpop.f32.mrb[114].mxu1 }
 0x414   :  { %v2156_v61 = vadd.f32 %v2155_v1, %v4858_v26  ;;  %v2157_v62 = vpop.f32.mrb[115].mxu1 }
 0x415   :  { %v3328_v63 = vpack.c.bf16 %v2154_v60, %v2152_v58  ;;  %v2158_v0 = vadd.f32 %v2157_v62, %v4860_v27 }
 0x417   :  { %2694 = vst [vmem:[#allocation2 + $0x140] sm:$0xff] %v3328_v63  ;;  %v3329_v2 = vpack.c.bf16 %v2158_v0, %v2156_v61 }
 0x419   :  { %2695 = vst [vmem:[#allocation2 + $0x148] sm:$0xff] %v3329_v2  ;;  %v2161_v38 = vpop.f32.mrb[116].mxu1 }
 0x41a   :  { %v2162_v6 = vadd.f32 %v2161_v38, %v4858_v26  ;;  %v2163_v17 = vpop.f32.mrb[117].mxu1 }
 0x41b   :  { %v2164_v7 = vadd.f32 %v2163_v17, %v4860_v27  ;;  %v2165_v8 = vpop.f32.mrb[118].mxu1 }
 0x41c   :  { %v2166_v31 = vadd.f32 %v2165_v8, %v4858_v26  ;;  %v2167_v3 = vpop.f32.mrb[119].mxu1 }
 0x41d   :  { %v3330_v16 = vpack.c.bf16 %v2164_v7, %v2162_v6  ;;  %v2168_v9 = vadd.f32 %v2167_v3, %v4860_v27 }
 0x41f   :  { %2696 = vst [vmem:[#allocation2 + $0x150] sm:$0xff] %v3330_v16  ;;  %v3331_v12 = vpack.c.bf16 %v2168_v9, %v2166_v31 }
 0x421   :  { %2697 = vst [vmem:[#allocation2 + $0x158] sm:$0xff] %v3331_v12  ;;  %v2171_v13 = vpop.f32.mrb[120].mxu1 }
 0x422   :  { %v2172_v11 = vadd.f32 %v2171_v13, %v4858_v26  ;;  %v2173_v14 = vpop.f32.mrb[121].mxu1 }
 0x423   :  { %v2174_v36 = vadd.f32 %v2173_v14, %v4860_v27  ;;  %v2175_v15 = vpop.f32.mrb[122].mxu1 }
 0x424   :  { %v2176_v20 = vadd.f32 %v2175_v15, %v4858_v26  ;;  %v2177_v53 = vpop.f32.mrb[123].mxu1 }
 0x425   :  { %v3332_v21 = vpack.c.bf16 %v2174_v36, %v2172_v11  ;;  %v2178_v33 = vadd.f32 %v2177_v53, %v4860_v27 }
 0x427   :  { %2698 = vst [vmem:[#allocation2 + $0x160] sm:$0xff] %v3332_v21  ;;  %v3333_v22 = vpack.c.bf16 %v2178_v33, %v2176_v20 }
 0x429   :  { %2699 = vst [vmem:[#allocation2 + $0x168] sm:$0xff] %v3333_v22  ;;  %v2181_v23 = vpop.f32.mrb[124].mxu1 }
 0x42a   :  { %v2182_v25 = vadd.f32 %v2181_v23, %v4858_v26  ;;  %v2183_v28 = vpop.f32.mrb[125].mxu1 }
 0x42b   :  { %v2184_v29 = vadd.f32 %v2183_v28, %v4860_v27  ;;  %v2185_v19 = vpop.f32.mrb[126].mxu1 }
 0x42c   :  { %v2186_v51 = vadd.f32 %v2185_v19, %v4858_v26  ;;  %v2187_v30 = vpop.f32.mrb[127].mxu1 }
 0x42d   :  { %v3334_v32 = vpack.c.bf16 %v2184_v29, %v2182_v25  ;;  %v2188_v52 = vadd.f32 %v2187_v30, %v4860_v27 }
 0x42f   :  { %2700 = vst [vmem:[#allocation2 + $0x170] sm:$0xff] %v3334_v32  ;;  %v3335_v10 = vpack.c.bf16 %v2188_v52, %v2186_v51 }
 0x431   :  { %2701 = vst [vmem:[#allocation2 + $0x178] sm:$0xff] %v3335_v10  ;;  %v2191_v54 = vpop.f32.mrb[128].mxu1 }
 0x432   :  { %v2192_v37 = vadd.f32 %v2191_v54, %v4858_v26  ;;  %v2193_v40 = vpop.f32.mrb[129].mxu1 }
 0x433   :  { %v2194_v18 = vadd.f32 %v2193_v40, %v4860_v27  ;;  %v2195_v41 = vpop.f32.mrb[130].mxu1 }
 0x434   :  { %v2196_v42 = vadd.f32 %v2195_v41, %v4858_v26  ;;  %v2197_v43 = vpop.f32.mrb[131].mxu1 }
 0x435   :  { %v3336_v35 = vpack.c.bf16 %v2194_v18, %v2192_v37  ;;  %v2198_v44 = vadd.f32 %v2197_v43, %v4860_v27 }
 0x437   :  { %2702 = vst [vmem:[#allocation2 + $0x180] sm:$0xff] %v3336_v35  ;;  %v3337_v4 = vpack.c.bf16 %v2198_v44, %v2196_v42 }
 0x439   :  { %2703 = vst [vmem:[#allocation2 + $0x188] sm:$0xff] %v3337_v4  ;;  %v2201_v45 = vpop.f32.mrb[132].mxu1 }
 0x43a   :  { %v2202_v34 = vadd.f32 %v2201_v45, %v4858_v26  ;;  %v2203_v46 = vpop.f32.mrb[133].mxu1 }
 0x43b   :  { %v2204_v5 = vadd.f32 %v2203_v46, %v4860_v27  ;;  %v2205_v49 = vpop.f32.mrb[134].mxu1 }
 0x43c   :  { %v2206_v48 = vadd.f32 %v2205_v49, %v4858_v26  ;;  %v2207_v55 = vpop.f32.mrb[135].mxu1 }
 0x43d   :  { %v3338_v24 = vpack.c.bf16 %v2204_v5, %v2202_v34  ;;  %v2208_v39 = vadd.f32 %v2207_v55, %v4860_v27 }
 0x43f   :  { %2704 = vst [vmem:[#allocation2 + $0x190] sm:$0xff] %v3338_v24  ;;  %v3339_v56 = vpack.c.bf16 %v2208_v39, %v2206_v48 }
 0x441   :  { %2705 = vst [vmem:[#allocation2 + $0x198] sm:$0xff] %v3339_v56  ;;  %v2211_v57 = vpop.f32.mrb[136].mxu1 }
 0x442   :  { %v2212_v50 = vadd.f32 %v2211_v57, %v4858_v26  ;;  %v2213_v47 = vpop.f32.mrb[137].mxu1 }
 0x443   :  { %v2214_v58 = vadd.f32 %v2213_v47, %v4860_v27  ;;  %v2215_v59 = vpop.f32.mrb[138].mxu1 }
 0x444   :  { %v2216_v60 = vadd.f32 %v2215_v59, %v4858_v26  ;;  %v2217_v1 = vpop.f32.mrb[139].mxu1 }
 0x445   :  { %v3340_v61 = vpack.c.bf16 %v2214_v58, %v2212_v50  ;;  %v2218_v62 = vadd.f32 %v2217_v1, %v4860_v27 }
 0x447   :  { %2706 = vst [vmem:[#allocation2 + $0x1a0] sm:$0xff] %v3340_v61  ;;  %v3341_v63 = vpack.c.bf16 %v2218_v62, %v2216_v60 }
 0x449   :  { %2707 = vst [vmem:[#allocation2 + $0x1a8] sm:$0xff] %v3341_v63  ;;  %v2221_v0 = vpop.f32.mrb[140].mxu1 }
 0x44a   :  { %v2222_v2 = vadd.f32 %v2221_v0, %v4858_v26  ;;  %v2223_v38 = vpop.f32.mrb[141].mxu1 }
 0x44b   :  { %v2224_v6 = vadd.f32 %v2223_v38, %v4860_v27  ;;  %v2225_v17 = vpop.f32.mrb[142].mxu1 }
 0x44c   :  { %v2226_v7 = vadd.f32 %v2225_v17, %v4858_v26  ;;  %v2227_v8 = vpop.f32.mrb[143].mxu1 }
 0x44d   :  { %v3342_v31 = vpack.c.bf16 %v2224_v6, %v2222_v2  ;;  %v2228_v3 = vadd.f32 %v2227_v8, %v4860_v27 }
 0x44f   :  { %2708 = vst [vmem:[#allocation2 + $0x1b0] sm:$0xff] %v3342_v31  ;;  %v3343_v16 = vpack.c.bf16 %v2228_v3, %v2226_v7 }
 0x451   :  { %2709 = vst [vmem:[#allocation2 + $0x1b8] sm:$0xff] %v3343_v16  ;;  %v2231_v9 = vpop.f32.mrb[144].mxu1 }
 0x452   :  { %v2232_v12 = vadd.f32 %v2231_v9, %v4858_v26  ;;  %v2233_v13 = vpop.f32.mrb[145].mxu1 }
 0x453   :  { %v2234_v11 = vadd.f32 %v2233_v13, %v4860_v27  ;;  %v2235_v14 = vpop.f32.mrb[146].mxu1 }
 0x454   :  { %v2236_v36 = vadd.f32 %v2235_v14, %v4858_v26  ;;  %v2237_v15 = vpop.f32.mrb[147].mxu1 }
 0x455   :  { %v3344_v20 = vpack.c.bf16 %v2234_v11, %v2232_v12  ;;  %v2238_v53 = vadd.f32 %v2237_v15, %v4860_v27 }
 0x457   :  { %2710 = vst [vmem:[#allocation2 + $0x1c0] sm:$0xff] %v3344_v20  ;;  %v3345_v21 = vpack.c.bf16 %v2238_v53, %v2236_v36 }
 0x459   :  { %2711 = vst [vmem:[#allocation2 + $0x1c8] sm:$0xff] %v3345_v21  ;;  %v2241_v33 = vpop.f32.mrb[148].mxu1 }
 0x45a   :  { %v2242_v22 = vadd.f32 %v2241_v33, %v4858_v26  ;;  %v2243_v23 = vpop.f32.mrb[149].mxu1 }
 0x45b   :  { %v2244_v25 = vadd.f32 %v2243_v23, %v4860_v27  ;;  %v2245_v28 = vpop.f32.mrb[150].mxu1 }
 0x45c   :  { %v2246_v29 = vadd.f32 %v2245_v28, %v4858_v26  ;;  %v2247_v19 = vpop.f32.mrb[151].mxu1 }
 0x45d   :  { %v3346_v51 = vpack.c.bf16 %v2244_v25, %v2242_v22  ;;  %v2248_v30 = vadd.f32 %v2247_v19, %v4860_v27 }
 0x45f   :  { %2712 = vst [vmem:[#allocation2 + $0x1d0] sm:$0xff] %v3346_v51  ;;  %v3347_v32 = vpack.c.bf16 %v2248_v30, %v2246_v29 }
 0x461   :  { %2713 = vst [vmem:[#allocation2 + $0x1d8] sm:$0xff] %v3347_v32  ;;  %v2251_v52 = vpop.f32.mrb[152].mxu1 }
 0x462   :  { %v2252_v10 = vadd.f32 %v2251_v52, %v4858_v26  ;;  %v2253_v54 = vpop.f32.mrb[153].mxu1 }
 0x463   :  { %v2254_v37 = vadd.f32 %v2253_v54, %v4860_v27  ;;  %v2255_v40 = vpop.f32.mrb[154].mxu1 }
 0x464   :  { %v2256_v18 = vadd.f32 %v2255_v40, %v4858_v26  ;;  %v2257_v41 = vpop.f32.mrb[155].mxu1 }
 0x465   :  { %v3348_v42 = vpack.c.bf16 %v2254_v37, %v2252_v10  ;;  %v2258_v43 = vadd.f32 %v2257_v41, %v4860_v27 }
 0x467   :  { %2714 = vst [vmem:[#allocation2 + $0x1e0] sm:$0xff] %v3348_v42  ;;  %v3349_v35 = vpack.c.bf16 %v2258_v43, %v2256_v18 }
 0x469   :  { %2715 = vst [vmem:[#allocation2 + $0x1e8] sm:$0xff] %v3349_v35  ;;  %v2261_v44 = vpop.f32.mrb[156].mxu1 }
 0x46a   :  { %v2262_v4 = vadd.f32 %v2261_v44, %v4858_v26  ;;  %v2263_v45 = vpop.f32.mrb[157].mxu1 }
 0x46b   :  { %v2264_v34 = vadd.f32 %v2263_v45, %v4860_v27  ;;  %v2265_v46 = vpop.f32.mrb[158].mxu1 }
 0x46c   :  { %v2266_v5 = vadd.f32 %v2265_v46, %v4858_v26  ;;  %v2267_v49 = vpop.f32.mrb[159].mxu1 }
 0x46d   :  { %v3350_v48 = vpack.c.bf16 %v2264_v34, %v2262_v4  ;;  %v2268_v55 = vadd.f32 %v2267_v49, %v4860_v27 }
 0x46f   :  { %2716 = vst [vmem:[#allocation2 + $0x1f0] sm:$0xff] %v3350_v48  ;;  %v3351_v24 = vpack.c.bf16 %v2268_v55, %v2266_v5 }
 0x471   :  { %2717 = vst [vmem:[#allocation2 + $0x1f8] sm:$0xff] %v3351_v24 }
 0x472   :  { %3862 = shalt.err (!%p3859_p12)
}
 0x473   :  { %s3863_s5 = scalar_lea.hbm %s5135_s9, 8192 }
 0x474   :  { %p3864_p13 = scmp.ne.s32.totalorder %s5135_s9, %s3863_s5  ;;  %p3867_p0 = scmp.lt.u32.totalorder %s3863_s5, %s5135_s9 }
 0x476   :  { %p3869_p1 = pnand %p3867_p0, %p3864_p13 }
 0x478   :  { %3872 = shalt.err (!%p3869_p1)
}
 0x479   :  { %3050 = dma.vmem_to_hbm [thread:$0]  %s3045_s1, 8192, %s5135_s9, [#allocation3], %s3880_s19, %s3880_s19, %s3881_s2  }
 0x47a   :  { %3873 = dma.done.wait [#allocation3], 8192  }
 0x47b   :  { %3874 = vsyncadd [#allocation3], 4294959104 }
 0x47c   :  { %3875 = dma.done.wait [#allocation5], 8192  }
 0x47d   :  { %3876 = vsyncadd [#allocation5], 4294959104 }
 0x47e   :  { %3069 = vsyncpa [#allocation3], 1 }
 0x47f   :  { %3070 = vsyncpa [#allocation5], 1 }

</bundles_post_ra>
